<compile_context>
chip_gen: v7x
topology: tpu7x:2x2x1
jax: 0.10.0
libtpu: 0.0.40
codegen_flags: <defaults>
</compile_context>

<pallas_src>
import functools

import jax
import jax.numpy as jnp
from jax.experimental import pallas as pl
from jax.experimental.pallas import tpu as pltpu


# --------------------------------------------------------------------------- #
# Fused tiled matmul:  y = [quickgelu]( LN(x)? @ W + b ) [+ residual]
# Grid tiles M (outer, "parallel") and N (inner, "arbitrary" when LN is fused).
# K stays whole inside the block; the LN'd x-tile is cached in a VMEM scratch at
# j == 0 and reused for every N tile (no redundant VPU work).
# --------------------------------------------------------------------------- #

def fused_matmul(x, w, b, *, ln=None, act=None, residual=None,
                 out_dtype=None, eps=1e-5, tm=256, tn=512):
    M, K = x.shape
    _, N = w.shape
    out_dtype = out_dtype or x.dtype

    has_ln = ln is not None
    has_res = residual is not None

    tm_ = M if M <= tm else tm                     # full dim or multiple of 8
    tn_ = N if N <= tn else tn                     # full dim or multiple of 128
    grid = (pl.cdiv(M, tm_), pl.cdiv(N, tn_))

    def kernel(*refs):
        if has_ln:
            x_ref, w_ref, b_ref, g_ref, bb_ref = refs[:5]
            idx = 5
        else:
            x_ref, w_ref, b_ref = refs[:3]
            idx = 3
        res_ref = None
        if has_res:
            res_ref = refs[idx]
            idx += 1
        o_ref = refs[idx]

        if has_ln:
            xn_ref = refs[idx + 1]                 # VMEM scratch, persists over j

            @pl.when(pl.program_id(1) == 0)
            def _():
                xf = x_ref[...].astype(jnp.float32)        # LN stats in f32
                mu = jnp.mean(xf, axis=-1, keepdims=True)
                var = jnp.mean(jnp.square(xf - mu), axis=-1, keepdims=True)
                xf = (xf - mu) * jax.lax.rsqrt(var + eps)
                xf = xf * g_ref[...] + bb_ref[...]
                xn_ref[...] = xf.astype(xn_ref.dtype)

            xm = xn_ref[...]
        else:
            xm = x_ref[...].astype(w_ref.dtype)

        y = jnp.dot(xm, w_ref[...], preferred_element_type=jnp.float32)
        y = y + b_ref[...]
        if act == "quickgelu":
            y = y * jax.nn.sigmoid(1.702 * y)
        if has_res:
            y = y + res_ref[...].astype(jnp.float32)
        o_ref[...] = y.astype(o_ref.dtype)

    inputs = [x, w, b]
    in_specs = [pl.BlockSpec((tm_, K), lambda i, j: (i, 0)),
                pl.BlockSpec((K, tn_), lambda i, j: (0, j)),
                pl.BlockSpec((1, tn_), lambda i, j: (0, j))]
    if has_ln:
        g, be = ln                                  # already (1, K) f32
        inputs += [g, be]
        in_specs += [pl.BlockSpec((1, K), lambda i, j: (0, 0)),
                     pl.BlockSpec((1, K), lambda i, j: (0, 0))]
    if has_res:
        inputs += [residual]
        in_specs += [pl.BlockSpec((tm_, tn_), lambda i, j: (i, j))]

    scratch = [pltpu.VMEM((tm_, K), w.dtype)] if has_ln else []
    dims = ("parallel", "arbitrary") if has_ln else ("parallel", "parallel")

    return pl.pallas_call(
        kernel,
        out_shape=jax.ShapeDtypeStruct((M, N), out_dtype),
        grid=grid,
        in_specs=in_specs,
        out_specs=pl.BlockSpec((tm_, tn_), lambda i, j: (i, j)),
        scratch_shapes=scratch,
        compiler_params=pltpu.CompilerParams(
            dimension_semantics=dims,
            vmem_limit_bytes=48 * 1024 * 1024),
    )(*inputs)


# --------------------------------------------------------------------------- #
# Standalone LayerNorm (only used for ln_pre), tiled over rows.
# g/b are pre-reshaped (1, D) f32.
# --------------------------------------------------------------------------- #

def _layernorm_kernel(x_ref, g_ref, b_ref, o_ref, *, eps):
    x = x_ref[...].astype(jnp.float32)
    mu = jnp.mean(x, axis=-1, keepdims=True)
    var = jnp.mean(jnp.square(x - mu), axis=-1, keepdims=True)
    y = (x - mu) * jax.lax.rsqrt(var + eps)
    o_ref[...] = (y * g_ref[...] + b_ref[...]).astype(o_ref.dtype)


def layernorm(x, g, b, *, eps=1e-5, out_dtype=None, tm=512):
    M, D = x.shape
    out_dtype = out_dtype or x.dtype
    tm_ = M if M <= tm else tm
    return pl.pallas_call(
        functools.partial(_layernorm_kernel, eps=eps),
        out_shape=jax.ShapeDtypeStruct((M, D), out_dtype),
        grid=(pl.cdiv(M, tm_),),
        in_specs=[pl.BlockSpec((tm_, D), lambda i: (i, 0)),
                  pl.BlockSpec((1, D), lambda i: (0, 0)),
                  pl.BlockSpec((1, D), lambda i: (0, 0))],
        out_specs=pl.BlockSpec((tm_, D), lambda i: (i, 0)),
        compiler_params=pltpu.CompilerParams(dimension_semantics=("parallel",)),
    )(x, g, b)


# --------------------------------------------------------------------------- #
# Multi-head attention: one grid step per batch element.
# Input is the packed (S, 3*width) qkv block straight from the in_proj matmul
# (no XLA head-split transpose); q/k/v per head are static in-VMEM slices.
# Output is lane-dense (S, width) so HBM stores are unmasked.
# The attention scale is already folded into the q-columns of in_proj.
# --------------------------------------------------------------------------- #

def _mha_kernel(qkv_ref, o_ref, *, heads, dh):
    width = heads * dh
    for h in range(heads):                              # unrolled, heads is small
        q = qkv_ref[:, h * dh:(h + 1) * dh]
        k = qkv_ref[:, width + h * dh: width + (h + 1) * dh]
        v = qkv_ref[:, 2 * width + h * dh: 2 * width + (h + 1) * dh]
        s = jax.lax.dot_general(q, k, (((1,), (1,)), ((), ())),
                                preferred_element_type=jnp.float32)
        s = s - jnp.max(s, axis=-1, keepdims=True)       # softmax math in f32
        e = jnp.exp(s)
        p = e * pl.reciprocal(jnp.sum(e, axis=-1, keepdims=True), approx=True)
        o = jnp.dot(p.astype(v.dtype), v,                # bf16 only at the MXU
                    preferred_element_type=jnp.float32)
        o_ref[:, h * dh:(h + 1) * dh] = o.astype(o_ref.dtype)


def mha_attention(qkv_bsd, heads, dh, out_dtype):
    B, S, threeW = qkv_bsd.shape
    width = heads * dh
    assert threeW == 3 * width
    return pl.pallas_call(
        functools.partial(_mha_kernel, heads=heads, dh=dh),
        out_shape=jax.ShapeDtypeStruct((B, S, width), out_dtype),
        grid=(B,),
        in_specs=[pl.BlockSpec((None, S, threeW), lambda b: (b, 0, 0))],
        out_specs=pl.BlockSpec((None, S, width), lambda b: (b, 0, 0)),
        compiler_params=pltpu.CompilerParams(
            dimension_semantics=("parallel",),
            vmem_limit_bytes=48 * 1024 * 1024),
    )(qkv_bsd)


# --------------------------------------------------------------------------- #
# Fused CSD head: ln_post(cls) -> feature; feature @ W_{content,style}; L2-norm.
# Matches F.normalize(p=2, dim=1, eps=1e-12).
# --------------------------------------------------------------------------- #

def _head_kernel(x_ref, g_ref, b_ref, wc_ref, ws_ref, f_ref, c_ref, s_ref, *, eps):
    x = x_ref[...].astype(jnp.float32)
    mu = jnp.mean(x, axis=-1, keepdims=True)
    var = jnp.mean(jnp.square(x - mu), axis=-1, keepdims=True)
    f = (x - mu) * jax.lax.rsqrt(var + eps) * g_ref[...] + b_ref[...]
    f_ref[...] = f.astype(f_ref.dtype)
    fb = f.astype(wc_ref.dtype)
    yc = jnp.dot(fb, wc_ref[...], preferred_element_type=jnp.float32)
    c_ref[...] = (yc * jax.lax.rsqrt(
        jnp.maximum(jnp.sum(yc * yc, axis=1, keepdims=True), 1e-24))).astype(c_ref.dtype)
    ys = jnp.dot(fb, ws_ref[...], preferred_element_type=jnp.float32)
    s_ref[...] = (ys * jax.lax.rsqrt(
        jnp.maximum(jnp.sum(ys * ys, axis=1, keepdims=True), 1e-24))).astype(s_ref.dtype)


def csd_head(cls_tok, g, b, w_style, w_content, *, eps=1e-5):
    B, D = cls_tok.shape
    P = w_style.shape[1]
    vspec = pl.BlockSpec(memory_space=pltpu.MemorySpace.VMEM)
    return pl.pallas_call(
        functools.partial(_head_kernel, eps=eps),
        out_shape=(jax.ShapeDtypeStruct((B, D), jnp.float32),
                   jax.ShapeDtypeStruct((B, P), jnp.float32),
                   jax.ShapeDtypeStruct((B, P), jnp.float32)),
        in_specs=[vspec] * 5,
        out_specs=(vspec, vspec, vspec),
    )(cls_tok, g, b, w_content, w_style)


# ------------------------------ parameters --------------------------------- #

def init_params(key, cfg):
    """Raw (PyTorch-layout, f32) parameters."""
    C, p, width, layers, proj_dim = (
        cfg['C'], cfg['patch'], cfg['width'], cfg['layers'], cfg['proj_dim'])
    gh, gw = cfg['H'] // p, cfg['W'] // p
    seq = gh * gw + 1

    def nrm(k, shape, scale=0.02):
        return scale * jax.random.normal(k, shape, jnp.float32)

    keys = iter(jax.random.split(key, 8 + 10 * layers))
    params = {
        'conv1_w': nrm(next(keys), (width, C, p, p)),
        'class_embedding': nrm(next(keys), (width,)),
        'positional_embedding': nrm(next(keys), (seq, width)),
        'ln_pre_g': jnp.ones((width,), jnp.float32),
        'ln_pre_b': jnp.zeros((width,), jnp.float32),
        'ln_post_g': jnp.ones((width,), jnp.float32),
        'ln_post_b': jnp.zeros((width,), jnp.float32),
        'last_layer_style': nrm(next(keys), (width, proj_dim)),
        'last_layer_content': nrm(next(keys), (width, proj_dim)),
        'layers': [],
    }
    for _ in range(layers):
        params['layers'].append({
            'ln1_g': jnp.ones((width,), jnp.float32),
            'ln1_b': jnp.zeros((width,), jnp.float32),
            'in_proj_w': nrm(next(keys), (width, 3 * width)),   # stored (in, out)
            'in_proj_b': nrm(next(keys), (3 * width,)),
            'out_proj_w': nrm(next(keys), (width, width)),
            'out_proj_b': nrm(next(keys), (width,)),
            'ln2_g': jnp.ones((width,), jnp.float32),
            'ln2_b': jnp.zeros((width,), jnp.float32),
            'fc1_w': nrm(next(keys), (width, 4 * width)),
            'fc1_b': nrm(next(keys), (4 * width,)),
            'fc2_w': nrm(next(keys), (4 * width, width)),
            'fc2_b': nrm(next(keys), (width,)),
        })
    return params


def prepare_params(params, cfg):
    """One-time conversion to the kernel-friendly format:
       bf16 MXU weights, (1, D) f32 biases/LN params, attention scale folded
       into the q-columns of in_proj (mathematically equivalent)."""
    C, p, width, heads = cfg['C'], cfg['patch'], cfg['width'], cfg['heads']
    dh = width // heads
    scale = dh ** -0.5
    bf16 = jnp.bfloat16

    def row(v):
        return v.reshape(1, -1).astype(jnp.float32)

    qscale = jnp.concatenate([jnp.full((width,), scale, jnp.float32),
                              jnp.ones((2 * width,), jnp.float32)])

    prep = {
        'patch_w': params['conv1_w'].reshape(width, C * p * p).T.astype(bf16),
        'patch_b': jnp.zeros((1, width), jnp.float32),
        'class_embedding': params['class_embedding'].astype(jnp.float32),
        'positional_embedding': params['positional_embedding'].astype(jnp.float32),
        'ln_pre_g': row(params['ln_pre_g']), 'ln_pre_b': row(params['ln_pre_b']),
        'ln_post_g': row(params['ln_post_g']), 'ln_post_b': row(params['ln_post_b']),
        'style_w': params['last_layer_style'].astype(bf16),
        'content_w': params['last_layer_content'].astype(bf16),
        'layers': [],
    }
    for lp in params['layers']:
        prep['layers'].append({
            'ln1_g': row(lp['ln1_g']), 'ln1_b': row(lp['ln1_b']),
            'in_proj_w': (lp['in_proj_w'] * qscale[None, :]).astype(bf16),
            'in_proj_b': (lp['in_proj_b'] * qscale).reshape(1, -1).astype(jnp.float32),
            'out_proj_w': lp['out_proj_w'].astype(bf16),
            'out_proj_b': row(lp['out_proj_b']),
            'ln2_g': row(lp['ln2_g']), 'ln2_b': row(lp['ln2_b']),
            'fc1_w': lp['fc1_w'].astype(bf16), 'fc1_b': row(lp['fc1_b']),
            'fc2_w': lp['fc2_w'].astype(bf16), 'fc2_b': row(lp['fc2_b']),
        })
    return prep


# ------------------------------ model wrapper ------------------------------ #

def csd_clip_forward(prep, x_nchw, cfg):
    B, C, H, W = x_nchw.shape
    p, width, heads = cfg['patch'], cfg['width'], cfg['heads']
    gh, gw = H // p, W // p
    dh = width // heads
    bf16 = jnp.bfloat16

    # --- patch embedding (conv k=s=patch, no bias): unfold (XLA) + fused matmul ---
    xp = x_nchw.reshape(B, C, gh, p, gw, p)
    xp = xp.transpose(0, 2, 4, 1, 3, 5).reshape(B * gh * gw, C * p * p)
    tok = fused_matmul(xp, prep['patch_w'], prep['patch_b'],
                       out_dtype=jnp.float32).reshape(B, gh * gw, width)

    # --- CLS token + positional embedding (XLA glue), ln_pre in Pallas ---
    cls = jnp.broadcast_to(prep['class_embedding'][None, None, :], (B, 1, width))
    x = jnp.concatenate([cls, tok], axis=1) + prep['positional_embedding'][None]
    S = x.shape[1]
    x2 = layernorm(x.reshape(B * S, width), prep['ln_pre_g'], prep['ln_pre_b'],
                   out_dtype=bf16)                              # residual stream (bf16)

    # --- transformer residual attention blocks ---
    for lp in prep['layers']:
        # attention branch: ln1 fused into the qkv projection (LN cached per M-tile)
        qkv = fused_matmul(x2, lp['in_proj_w'], lp['in_proj_b'],
                           ln=(lp['ln1_g'], lp['ln1_b']), out_dtype=bf16)
        # packed qkv consumed directly per batch element; no XLA transposes
        attn = mha_attention(qkv.reshape(B, S, 3 * width), heads, dh, bf16)
        x2 = fused_matmul(attn.reshape(B * S, width), lp['out_proj_w'],
                          lp['out_proj_b'], residual=x2, out_dtype=bf16)

        # MLP branch: ln2 + fc1 + QuickGELU fused; fc2 + residual fused
        h = fused_matmul(x2, lp['fc1_w'], lp['fc1_b'],
                         ln=(lp['ln2_g'], lp['ln2_b']), act="quickgelu",
                         out_dtype=bf16)
        x2 = fused_matmul(h, lp['fc2_w'], lp['fc2_b'],
                          residual=x2, out_dtype=bf16)

    # --- ln_post on CLS + both projection heads + L2 norms, one fused kernel ---
    cls_tok = x2.reshape(B, S, width)[:, 0, :]
    feature, content_output, style_output = csd_head(
        cls_tok, prep['ln_post_g'], prep['ln_post_b'],
        prep['style_w'], prep['content_w'])
    return feature, content_output, style_output


# ---------------------------------- main ----------------------------------- #

if __name__ == "__main__":
    # Small, shape-consistent synthetic config (analogue of the ViT backbone):
    # 3-channel 16x16 images, patch 8 -> 4 patches + CLS = 5 tokens,
    # width=32 (= embedding_dim = feature_dim), 4 heads, 2 layers, proj_dim=24.
    cfg = dict(C=3, H=16, W=16, patch=8, width=32, heads=4, layers=2, proj_dim=24)

    root = jax.random.PRNGKey(0)
    k_params, k_input = jax.random.split(root)
    raw_params = init_params(k_params, cfg)
    params = prepare_params(raw_params, cfg)   # one-time: bf16 weights, scale folded
    x = jax.random.normal(k_input, (2, cfg['C'], cfg['H'], cfg['W']), jnp.float32)

    forward = jax.jit(lambda p, xx: csd_clip_forward(p, xx, cfg))
    feature, content_output, style_output = jax.block_until_ready(forward(params, x))

    assert feature.shape == (2, cfg['width'])
    assert content_output.shape == (2, cfg['proj_dim'])
    assert style_output.shape == (2, cfg['proj_dim'])
    assert feature.dtype == jnp.float32
    print("KERNEL_OK")
</pallas_src>

<mosaic_0001>
module attributes {stable_mosaic.version = 11 : i64} {
  func.func @_layernorm_kernel(%arg0: i32, %arg1: memref<10x32xf32, #tpu.memory_space<vmem>>, %arg2: memref<1x32xf32, #tpu.memory_space<vmem>>, %arg3: memref<1x32xf32, #tpu.memory_space<vmem>>, %arg4: memref<10x32xbf16, #tpu.memory_space<vmem>>) attributes {dimension_semantics = [#tpu.dimension_semantics<parallel>], iteration_bounds = array<i64: 1>, scalar_prefetch = 0 : i64, scratch_operands = 0 : i64, tpu.core_type = #tpu.core_type<tc>, window_params = [{transform_indices = @transform_0, window_bounds = array<i64: 10, 32>}, {pipeline_mode = #tpu.pipeline_mode<synchronous>, transform_indices = @transform_1, window_bounds = array<i64: 1, 32>}, {pipeline_mode = #tpu.pipeline_mode<synchronous>, transform_indices = @transform_2, window_bounds = array<i64: 1, 32>}, {transform_indices = @transform_3, window_bounds = array<i64: 10, 32>}]} {
    %c0 = arith.constant 0 : index
    %c0_0 = arith.constant 0 : index
    %0 = vector.load %arg1[%c0, %c0_0] : memref<10x32xf32, #tpu.memory_space<vmem>>, vector<10x32xf32>
    %cst = arith.constant dense<0.000000e+00> : vector<10xf32>
    %1 = vector.multi_reduction <add>, %0, %cst [1] : vector<10x32xf32> to vector<10xf32>
    %2 = vector.shape_cast %1 : vector<10xf32> to vector<10x1xf32>
    %cst_1 = arith.constant 3.200000e+01 : f32
    %3 = vector.broadcast %cst_1 : f32 to vector<10x1xf32>
    %4 = arith.divf %2, %3 : vector<10x1xf32>
    %5 = vector.broadcast %4 : vector<10x1xf32> to vector<10x32xf32>
    %6 = arith.subf %0, %5 : vector<10x32xf32>
    %7 = arith.mulf %6, %6 : vector<10x32xf32>
    %cst_2 = arith.constant dense<0.000000e+00> : vector<10xf32>
    %8 = vector.multi_reduction <add>, %7, %cst_2 [1] : vector<10x32xf32> to vector<10xf32>
    %9 = vector.shape_cast %8 : vector<10xf32> to vector<10x1xf32>
    %cst_3 = arith.constant 3.200000e+01 : f32
    %10 = vector.broadcast %cst_3 : f32 to vector<10x1xf32>
    %11 = arith.divf %9, %10 : vector<10x1xf32>
    %12 = vector.broadcast %4 : vector<10x1xf32> to vector<10x32xf32>
    %13 = arith.subf %0, %12 : vector<10x32xf32>
    %cst_4 = arith.constant 9.99999974E-6 : f32
    %14 = vector.broadcast %cst_4 : f32 to vector<10x1xf32>
    %15 = arith.addf %11, %14 : vector<10x1xf32>
    %16 = math.rsqrt %15 : vector<10x1xf32>
    %17 = vector.broadcast %16 : vector<10x1xf32> to vector<10x32xf32>
    %18 = arith.mulf %13, %17 : vector<10x32xf32>
    %c0_5 = arith.constant 0 : index
    %c0_6 = arith.constant 0 : index
    %19 = vector.load %arg2[%c0_5, %c0_6] : memref<1x32xf32, #tpu.memory_space<vmem>>, vector<1x32xf32>
    %20 = vector.broadcast %19 : vector<1x32xf32> to vector<10x32xf32>
    %21 = arith.mulf %18, %20 : vector<10x32xf32>
    %c0_7 = arith.constant 0 : index
    %c0_8 = arith.constant 0 : index
    %22 = vector.load %arg3[%c0_7, %c0_8] : memref<1x32xf32, #tpu.memory_space<vmem>>, vector<1x32xf32>
    %23 = vector.broadcast %22 : vector<1x32xf32> to vector<10x32xf32>
    %24 = arith.addf %21, %23 : vector<10x32xf32>
    %25 = arith.truncf %24 : vector<10x32xf32> to vector<10x32xbf16>
    %c0_9 = arith.constant 0 : index
    %c0_10 = arith.constant 0 : index
    %26 = vector.load %arg4[%c0_9, %c0_10] : memref<10x32xbf16, #tpu.memory_space<vmem>>, vector<10x32xbf16>
    tpu.vector_store %arg4[%c0_9, %c0_10], %25 {strides = array<i32>} : memref<10x32xbf16, #tpu.memory_space<vmem>>, vector<10x32xbf16>,
    return
  }
  func.func @transform_0(%arg0: i32) -> (i32, i32) {
    %c0_i32 = arith.constant 0 : i32
    %c0_i32_0 = arith.constant 0 : i32
    return %arg0, %c0_i32 : i32, i32
  }
  func.func @transform_1(%arg0: i32) -> (i32, i32) {
    %c0_i32 = arith.constant 0 : i32
    %c0_i32_0 = arith.constant 0 : i32
    %c0_i32_1 = arith.constant 0 : i32
    return %c0_i32, %c0_i32_0 : i32, i32
  }
  func.func @transform_2(%arg0: i32) -> (i32, i32) {
    %c0_i32 = arith.constant 0 : i32
    %c0_i32_0 = arith.constant 0 : i32
    %c0_i32_1 = arith.constant 0 : i32
    return %c0_i32, %c0_i32_0 : i32, i32
  }
  func.func @transform_3(%arg0: i32) -> (i32, i32) {
    %c0_i32 = arith.constant 0 : i32
    %c0_i32_0 = arith.constant 0 : i32
    return %arg0, %c0_i32 : i32, i32
  }
}

module attributes {stable_mosaic.version = 11 : i64} {
  func.func @kernel(%arg0: i32, %arg1: i32, %arg2: memref<8x192xf32, #tpu.memory_space<vmem>>, %arg3: memref<192x32xbf16, #tpu.memory_space<vmem>>, %arg4: memref<1x32xf32, #tpu.memory_space<vmem>>, %arg5: memref<8x32xf32, #tpu.memory_space<vmem>>) attributes {dimension_semantics = [#tpu.dimension_semantics<parallel>, #tpu.dimension_semantics<parallel>], iteration_bounds = array<i64: 1, 1>, scalar_prefetch = 0 : i64, scratch_operands = 0 : i64, tpu.core_type = #tpu.core_type<tc>, window_params = [{transform_indices = @transform_0, window_bounds = array<i64: 8, 192>}, {transform_indices = @transform_1, window_bounds = array<i64: 192, 32>}, {transform_indices = @transform_2, window_bounds = array<i64: 1, 32>}, {transform_indices = @transform_3, window_bounds = array<i64: 8, 32>}]} {
    %c0 = arith.constant 0 : index
    %c0_0 = arith.constant 0 : index
    %0 = vector.load %arg2[%c0, %c0_0] : memref<8x192xf32, #tpu.memory_space<vmem>>, vector<8x192xf32>
    %1 = arith.truncf %0 : vector<8x192xf32> to vector<8x192xbf16>
    %c0_1 = arith.constant 0 : index
    %c0_2 = arith.constant 0 : index
    %2 = vector.load %arg3[%c0_1, %c0_2] : memref<192x32xbf16, #tpu.memory_space<vmem>>, vector<192x32xbf16>
    %cst = arith.constant dense<0.000000e+00> : vector<8x32xf32>
    %3 = tpu.matmul %1, %2, %cst {dimension_numbers = #tpu.dot_dimension_numbers<[1], [0], [0], [1], [0, 0, 1, 1], [], []>} : vector<8x192xbf16>, vector<192x32xbf16>, vector<8x32xf32> -> vector<8x32xf32>
    %c0_3 = arith.constant 0 : index
    %c0_4 = arith.constant 0 : index
    %4 = vector.load %arg4[%c0_3, %c0_4] : memref<1x32xf32, #tpu.memory_space<vmem>>, vector<1x32xf32>
    %5 = vector.broadcast %4 : vector<1x32xf32> to vector<8x32xf32>
    %6 = arith.addf %3, %5 : vector<8x32xf32>
    %c0_5 = arith.constant 0 : index
    %c0_6 = arith.constant 0 : index
    %7 = vector.load %arg5[%c0_5, %c0_6] : memref<8x32xf32, #tpu.memory_space<vmem>>, vector<8x32xf32>
    tpu.vector_store %arg5[%c0_5, %c0_6], %6 {strides = array<i32>} : memref<8x32xf32, #tpu.memory_space<vmem>>, vector<8x32xf32>,
    return
  }
  func.func @transform_0(%arg0: i32, %arg1: i32) -> (i32, i32) {
    %c0_i32 = arith.constant 0 : i32
    %c0_i32_0 = arith.constant 0 : i32
    return %arg0, %c0_i32 : i32, i32
  }
  func.func @transform_1(%arg0: i32, %arg1: i32) -> (i32, i32) {
    %c0_i32 = arith.constant 0 : i32
    %c0_i32_0 = arith.constant 0 : i32
    return %c0_i32, %arg1 : i32, i32
  }
  func.func @transform_2(%arg0: i32, %arg1: i32) -> (i32, i32) {
    %c0_i32 = arith.constant 0 : i32
    %c0_i32_0 = arith.constant 0 : i32
    return %c0_i32, %arg1 : i32, i32
  }
  func.func @transform_3(%arg0: i32, %arg1: i32) -> (i32, i32) {
    %c0_i32 = arith.constant 0 : i32
    return %arg0, %arg1 : i32, i32
  }
}

module attributes {stable_mosaic.version = 11 : i64} {
  func.func @_mha_kernel(%arg0: i32, %arg1: memref<1x5x96xbf16, #tpu.memory_space<vmem>>, %arg2: memref<1x5x32xbf16, #tpu.memory_space<vmem>>) attributes {dimension_semantics = [#tpu.dimension_semantics<parallel>], iteration_bounds = array<i64: 2>, scalar_prefetch = 0 : i64, scratch_operands = 0 : i64, tpu.core_type = #tpu.core_type<tc>, window_params = [{transform_indices = @transform_0, window_bounds = array<i64: 1, 5, 96>}, {transform_indices = @transform_1, window_bounds = array<i64: 1, 5, 32>}]} {
    %c0 = arith.constant 0 : index
    %c0_0 = arith.constant 0 : index
    %c0_1 = arith.constant 0 : index
    %0 = vector.load %arg1[%c0, %c0_0, %c0_1] : memref<1x5x96xbf16, #tpu.memory_space<vmem>>, vector<1x5x8xbf16>
    %1 = vector.shape_cast %0 : vector<1x5x8xbf16> to vector<5x8xbf16>
    %c0_2 = arith.constant 0 : index
    %c0_3 = arith.constant 0 : index
    %c32 = arith.constant 32 : index
    %2 = vector.load %arg1[%c0_2, %c0_3, %c32] : memref<1x5x96xbf16, #tpu.memory_space<vmem>>, vector<1x5x8xbf16>
    %3 = vector.shape_cast %2 : vector<1x5x8xbf16> to vector<5x8xbf16>
    %c0_4 = arith.constant 0 : index
    %c0_5 = arith.constant 0 : index
    %c64 = arith.constant 64 : index
    %4 = vector.load %arg1[%c0_4, %c0_5, %c64] : memref<1x5x96xbf16, #tpu.memory_space<vmem>>, vector<1x5x8xbf16>
    %5 = vector.shape_cast %4 : vector<1x5x8xbf16> to vector<5x8xbf16>
    %cst = arith.constant dense<0.000000e+00> : vector<5x5xf32>
    %6 = tpu.matmul %1, %3, %cst {dimension_numbers = #tpu.dot_dimension_numbers<[1], [1], [0], [0], [0, 0, 1, 0], [], []>} : vector<5x8xbf16>, vector<5x8xbf16>, vector<5x5xf32> -> vector<5x5xf32>
    %cst_6 = arith.constant dense<0xFF800000> : vector<5xf32>
    %7 = vector.multi_reduction <maximumf>, %6, %cst_6 [1] : vector<5x5xf32> to vector<5xf32>
    %8 = vector.shape_cast %7 : vector<5xf32> to vector<5x1xf32>
    %9 = vector.broadcast %8 : vector<5x1xf32> to vector<5x5xf32>
    %10 = arith.subf %6, %9 : vector<5x5xf32>
    %11 = math.exp %10 : vector<5x5xf32>
    %cst_7 = arith.constant dense<0.000000e+00> : vector<5xf32>
    %12 = vector.multi_reduction <add>, %11, %cst_7 [1] : vector<5x5xf32> to vector<5xf32>
    %13 = vector.shape_cast %12 : vector<5xf32> to vector<5x1xf32>
    %14 = tpu.reciprocal %13 {approx = true} : vector<5x1xf32> -> vector<5x1xf32>
    %15 = vector.broadcast %14 : vector<5x1xf32> to vector<5x5xf32>
    %16 = arith.mulf %11, %15 : vector<5x5xf32>
    %17 = arith.truncf %16 : vector<5x5xf32> to vector<5x5xbf16>
    %cst_8 = arith.constant dense<0.000000e+00> : vector<5x8xf32>
    %18 = tpu.matmul %17, %5, %cst_8 {dimension_numbers = #tpu.dot_dimension_numbers<[1], [0], [0], [1], [0, 0, 1, 1], [], []>} : vector<5x5xbf16>, vector<5x8xbf16>, vector<5x8xf32> -> vector<5x8xf32>
    %19 = arith.truncf %18 : vector<5x8xf32> to vector<5x8xbf16>
    %c0_9 = arith.constant 0 : index
    %c0_10 = arith.constant 0 : index
    %c0_11 = arith.constant 0 : index
    %20 = vector.load %arg2[%c0_9, %c0_10, %c0_11] : memref<1x5x32xbf16, #tpu.memory_space<vmem>>, vector<1x5x8xbf16>
    %21 = vector.shape_cast %20 : vector<1x5x8xbf16> to vector<5x8xbf16>
    %22 = vector.shape_cast %19 : vector<5x8xbf16> to vector<1x5x8xbf16>
    tpu.vector_store %arg2[%c0_9, %c0_10, %c0_11], %22 {strides = array<i32>} : memref<1x5x32xbf16, #tpu.memory_space<vmem>>, vector<1x5x8xbf16>,
    %c0_12 = arith.constant 0 : index
    %c0_13 = arith.constant 0 : index
    %c8 = arith.constant 8 : index
    %23 = vector.load %arg1[%c0_12, %c0_13, %c8] : memref<1x5x96xbf16, #tpu.memory_space<vmem>>, vector<1x5x8xbf16>
    %24 = vector.shape_cast %23 : vector<1x5x8xbf16> to vector<5x8xbf16>
    %c0_14 = arith.constant 0 : index
    %c0_15 = arith.constant 0 : index
    %c40 = arith.constant 40 : index
    %25 = vector.load %arg1[%c0_14, %c0_15, %c40] : memref<1x5x96xbf16, #tpu.memory_space<vmem>>, vector<1x5x8xbf16>
    %26 = vector.shape_cast %25 : vector<1x5x8xbf16> to vector<5x8xbf16>
    %c0_16 = arith.constant 0 : index
    %c0_17 = arith.constant 0 : index
    %c72 = arith.constant 72 : index
    %27 = vector.load %arg1[%c0_16, %c0_17, %c72] : memref<1x5x96xbf16, #tpu.memory_space<vmem>>, vector<1x5x8xbf16>
    %28 = vector.shape_cast %27 : vector<1x5x8xbf16> to vector<5x8xbf16>
    %cst_18 = arith.constant dense<0.000000e+00> : vector<5x5xf32>
    %29 = tpu.matmul %24, %26, %cst_18 {dimension_numbers = #tpu.dot_dimension_numbers<[1], [1], [0], [0], [0, 0, 1, 0], [], []>} : vector<5x8xbf16>, vector<5x8xbf16>, vector<5x5xf32> -> vector<5x5xf32>
    %cst_19 = arith.constant dense<0xFF800000> : vector<5xf32>
    %30 = vector.multi_reduction <maximumf>, %29, %cst_19 [1] : vector<5x5xf32> to vector<5xf32>
    %31 = vector.shape_cast %30 : vector<5xf32> to vector<5x1xf32>
    %32 = vector.broadcast %31 : vector<5x1xf32> to vector<5x5xf32>
    %33 = arith.subf %29, %32 : vector<5x5xf32>
    %34 = math.exp %33 : vector<5x5xf32>
    %cst_20 = arith.constant dense<0.000000e+00> : vector<5xf32>
    %35 = vector.multi_reduction <add>, %34, %cst_20 [1] : vector<5x5xf32> to vector<5xf32>
    %36 = vector.shape_cast %35 : vector<5xf32> to vector<5x1xf32>
    %37 = tpu.reciprocal %36 {approx = true} : vector<5x1xf32> -> vector<5x1xf32>
    %38 = vector.broadcast %37 : vector<5x1xf32> to vector<5x5xf32>
    %39 = arith.mulf %34, %38 : vector<5x5xf32>
    %40 = arith.truncf %39 : vector<5x5xf32> to vector<5x5xbf16>
    %cst_21 = arith.constant dense<0.000000e+00> : vector<5x8xf32>
    %41 = tpu.matmul %40, %28, %cst_21 {dimension_numbers = #tpu.dot_dimension_numbers<[1], [0], [0], [1], [0, 0, 1, 1], [], []>} : vector<5x5xbf16>, vector<5x8xbf16>, vector<5x8xf32> -> vector<5x8xf32>
    %42 = arith.truncf %41 : vector<5x8xf32> to vector<5x8xbf16>
    %c0_22 = arith.constant 0 : index
    %c0_23 = arith.constant 0 : index
    %c8_24 = arith.constant 8 : index
    %43 = vector.load %arg2[%c0_22, %c0_23, %c8_24] : memref<1x5x32xbf16, #tpu.memory_space<vmem>>, vector<1x5x8xbf16>
    %44 = vector.shape_cast %43 : vector<1x5x8xbf16> to vector<5x8xbf16>
    %45 = vector.shape_cast %42 : vector<5x8xbf16> to vector<1x5x8xbf16>
    tpu.vector_store %arg2[%c0_22, %c0_23, %c8_24], %45 {strides = array<i32>} : memref<1x5x32xbf16, #tpu.memory_space<vmem>>, vector<1x5x8xbf16>,
    %c0_25 = arith.constant 0 : index
    %c0_26 = arith.constant 0 : index
    %c16 = arith.constant 16 : index
    %46 = vector.load %arg1[%c0_25, %c0_26, %c16] : memref<1x5x96xbf16, #tpu.memory_space<vmem>>, vector<1x5x8xbf16>
    %47 = vector.shape_cast %46 : vector<1x5x8xbf16> to vector<5x8xbf16>
    %c0_27 = arith.constant 0 : index
    %c0_28 = arith.constant 0 : index
    %c48 = arith.constant 48 : index
    %48 = vector.load %arg1[%c0_27, %c0_28, %c48] : memref<1x5x96xbf16, #tpu.memory_space<vmem>>, vector<1x5x8xbf16>
    %49 = vector.shape_cast %48 : vector<1x5x8xbf16> to vector<5x8xbf16>
    %c0_29 = arith.constant 0 : index
    %c0_30 = arith.constant 0 : index
    %c80 = arith.constant 80 : index
    %50 = vector.load %arg1[%c0_29, %c0_30, %c80] : memref<1x5x96xbf16, #tpu.memory_space<vmem>>, vector<1x5x8xbf16>
    %51 = vector.shape_cast %50 : vector<1x5x8xbf16> to vector<5x8xbf16>
    %cst_31 = arith.constant dense<0.000000e+00> : vector<5x5xf32>
    %52 = tpu.matmul %47, %49, %cst_31 {dimension_numbers = #tpu.dot_dimension_numbers<[1], [1], [0], [0], [0, 0, 1, 0], [], []>} : vector<5x8xbf16>, vector<5x8xbf16>, vector<5x5xf32> -> vector<5x5xf32>
    %cst_32 = arith.constant dense<0xFF800000> : vector<5xf32>
    %53 = vector.multi_reduction <maximumf>, %52, %cst_32 [1] : vector<5x5xf32> to vector<5xf32>
    %54 = vector.shape_cast %53 : vector<5xf32> to vector<5x1xf32>
    %55 = vector.broadcast %54 : vector<5x1xf32> to vector<5x5xf32>
    %56 = arith.subf %52, %55 : vector<5x5xf32>
    %57 = math.exp %56 : vector<5x5xf32>
    %cst_33 = arith.constant dense<0.000000e+00> : vector<5xf32>
    %58 = vector.multi_reduction <add>, %57, %cst_33 [1] : vector<5x5xf32> to vector<5xf32>
    %59 = vector.shape_cast %58 : vector<5xf32> to vector<5x1xf32>
    %60 = tpu.reciprocal %59 {approx = true} : vector<5x1xf32> -> vector<5x1xf32>
    %61 = vector.broadcast %60 : vector<5x1xf32> to vector<5x5xf32>
    %62 = arith.mulf %57, %61 : vector<5x5xf32>
    %63 = arith.truncf %62 : vector<5x5xf32> to vector<5x5xbf16>
    %cst_34 = arith.constant dense<0.000000e+00> : vector<5x8xf32>
    %64 = tpu.matmul %63, %51, %cst_34 {dimension_numbers = #tpu.dot_dimension_numbers<[1], [0], [0], [1], [0, 0, 1, 1], [], []>} : vector<5x5xbf16>, vector<5x8xbf16>, vector<5x8xf32> -> vector<5x8xf32>
    %65 = arith.truncf %64 : vector<5x8xf32> to vector<5x8xbf16>
    %c0_35 = arith.constant 0 : index
    %c0_36 = arith.constant 0 : index
    %c16_37 = arith.constant 16 : index
    %66 = vector.load %arg2[%c0_35, %c0_36, %c16_37] : memref<1x5x32xbf16, #tpu.memory_space<vmem>>, vector<1x5x8xbf16>
    %67 = vector.shape_cast %66 : vector<1x5x8xbf16> to vector<5x8xbf16>
    %68 = vector.shape_cast %65 : vector<5x8xbf16> to vector<1x5x8xbf16>
    tpu.vector_store %arg2[%c0_35, %c0_36, %c16_37], %68 {strides = array<i32>} : memref<1x5x32xbf16, #tpu.memory_space<vmem>>, vector<1x5x8xbf16>,
    %c0_38 = arith.constant 0 : index
    %c0_39 = arith.constant 0 : index
    %c24 = arith.constant 24 : index
    %69 = vector.load %arg1[%c0_38, %c0_39, %c24] : memref<1x5x96xbf16, #tpu.memory_space<vmem>>, vector<1x5x8xbf16>
    %70 = vector.shape_cast %69 : vector<1x5x8xbf16> to vector<5x8xbf16>
    %c0_40 = arith.constant 0 : index
    %c0_41 = arith.constant 0 : index
    %c56 = arith.constant 56 : index
    %71 = vector.load %arg1[%c0_40, %c0_41, %c56] : memref<1x5x96xbf16, #tpu.memory_space<vmem>>, vector<1x5x8xbf16>
    %72 = vector.shape_cast %71 : vector<1x5x8xbf16> to vector<5x8xbf16>
    %c0_42 = arith.constant 0 : index
    %c0_43 = arith.constant 0 : index
    %c88 = arith.constant 88 : index
    %73 = vector.load %arg1[%c0_42, %c0_43, %c88] : memref<1x5x96xbf16, #tpu.memory_space<vmem>>, vector<1x5x8xbf16>
    %74 = vector.shape_cast %73 : vector<1x5x8xbf16> to vector<5x8xbf16>
    %cst_44 = arith.constant dense<0.000000e+00> : vector<5x5xf32>
    %75 = tpu.matmul %70, %72, %cst_44 {dimension_numbers = #tpu.dot_dimension_numbers<[1], [1], [0], [0], [0, 0, 1, 0], [], []>} : vector<5x8xbf16>, vector<5x8xbf16>, vector<5x5xf32> -> vector<5x5xf32>
    %cst_45 = arith.constant dense<0xFF800000> : vector<5xf32>
    %76 = vector.multi_reduction <maximumf>, %75, %cst_45 [1] : vector<5x5xf32> to vector<5xf32>
    %77 = vector.shape_cast %76 : vector<5xf32> to vector<5x1xf32>
    %78 = vector.broadcast %77 : vector<5x1xf32> to vector<5x5xf32>
    %79 = arith.subf %75, %78 : vector<5x5xf32>
    %80 = math.exp %79 : vector<5x5xf32>
    %cst_46 = arith.constant dense<0.000000e+00> : vector<5xf32>
    %81 = vector.multi_reduction <add>, %80, %cst_46 [1] : vector<5x5xf32> to vector<5xf32>
    %82 = vector.shape_cast %81 : vector<5xf32> to vector<5x1xf32>
    %83 = tpu.reciprocal %82 {approx = true} : vector<5x1xf32> -> vector<5x1xf32>
    %84 = vector.broadcast %83 : vector<5x1xf32> to vector<5x5xf32>
    %85 = arith.mulf %80, %84 : vector<5x5xf32>
    %86 = arith.truncf %85 : vector<5x5xf32> to vector<5x5xbf16>
    %cst_47 = arith.constant dense<0.000000e+00> : vector<5x8xf32>
    %87 = tpu.matmul %86, %74, %cst_47 {dimension_numbers = #tpu.dot_dimension_numbers<[1], [0], [0], [1], [0, 0, 1, 1], [], []>} : vector<5x5xbf16>, vector<5x8xbf16>, vector<5x8xf32> -> vector<5x8xf32>
    %88 = arith.truncf %87 : vector<5x8xf32> to vector<5x8xbf16>
    %c0_48 = arith.constant 0 : index
    %c0_49 = arith.constant 0 : index
    %c24_50 = arith.constant 24 : index
    %89 = vector.load %arg2[%c0_48, %c0_49, %c24_50] : memref<1x5x32xbf16, #tpu.memory_space<vmem>>, vector<1x5x8xbf16>
    %90 = vector.shape_cast %89 : vector<1x5x8xbf16> to vector<5x8xbf16>
    %91 = vector.shape_cast %88 : vector<5x8xbf16> to vector<1x5x8xbf16>
    tpu.vector_store %arg2[%c0_48, %c0_49, %c24_50], %91 {strides = array<i32>} : memref<1x5x32xbf16, #tpu.memory_space<vmem>>, vector<1x5x8xbf16>,
    return
  }
  func.func @transform_0(%arg0: i32) -> (i32, i32, i32) {
    %c0_i32 = arith.constant 0 : i32
    %c0_i32_0 = arith.constant 0 : i32
    %c0_i32_1 = arith.constant 0 : i32
    return %arg0, %c0_i32, %c0_i32_0 : i32, i32, i32
  }
  func.func @transform_1(%arg0: i32) -> (i32, i32, i32) {
    %c0_i32 = arith.constant 0 : i32
    %c0_i32_0 = arith.constant 0 : i32
    %c0_i32_1 = arith.constant 0 : i32
    return %arg0, %c0_i32, %c0_i32_0 : i32, i32, i32
  }
}

module attributes {stable_mosaic.version = 11 : i64} {
  func.func @kernel(%arg0: i32, %arg1: i32, %arg2: memref<10x32xbf16, #tpu.memory_space<vmem>>, %arg3: memref<32x96xbf16, #tpu.memory_space<vmem>>, %arg4: memref<1x96xf32, #tpu.memory_space<vmem>>, %arg5: memref<1x32xf32, #tpu.memory_space<vmem>>, %arg6: memref<1x32xf32, #tpu.memory_space<vmem>>, %arg7: memref<10x96xbf16, #tpu.memory_space<vmem>>, %arg8: memref<10x32xbf16, #tpu.memory_space<vmem>>) attributes {dimension_semantics = [#tpu.dimension_semantics<parallel>, #tpu.dimension_semantics<arbitrary>], iteration_bounds = array<i64: 1, 1>, scalar_prefetch = 0 : i64, scratch_operands = 1 : i64, tpu.core_type = #tpu.core_type<tc>, window_params = [{transform_indices = @transform_0, window_bounds = array<i64: 10, 32>}, {transform_indices = @transform_1, window_bounds = array<i64: 32, 96>}, {transform_indices = @transform_2, window_bounds = array<i64: 1, 96>}, {pipeline_mode = #tpu.pipeline_mode<synchronous>, transform_indices = @transform_3, window_bounds = array<i64: 1, 32>}, {pipeline_mode = #tpu.pipeline_mode<synchronous>, transform_indices = @transform_4, window_bounds = array<i64: 1, 32>}, {transform_indices = @transform_5, window_bounds = array<i64: 10, 96>}]} {
    %c0_i32 = arith.constant 0 : i32
    %0 = arith.cmpi eq, %arg1, %c0_i32 : i32
    %1 = arith.extui %0 : i1 to i32
    %c0_i32_0 = arith.constant 0 : i32
    %2 = arith.cmpi ne, %1, %c0_i32_0 : i32
    scf.if %2 {
      %c0_8 = arith.constant 0 : index
      %c0_9 = arith.constant 0 : index
      %11 = vector.load %arg2[%c0_8, %c0_9] : memref<10x32xbf16, #tpu.memory_space<vmem>>, vector<10x32xbf16>
      %12 = arith.extf %11 : vector<10x32xbf16> to vector<10x32xf32>
      %cst_10 = arith.constant dense<0.000000e+00> : vector<10xf32>
      %13 = vector.multi_reduction <add>, %12, %cst_10 [1] : vector<10x32xf32> to vector<10xf32>
      %14 = vector.shape_cast %13 : vector<10xf32> to vector<10x1xf32>
      %cst_11 = arith.constant 3.200000e+01 : f32
      %15 = vector.broadcast %cst_11 : f32 to vector<10x1xf32>
      %16 = arith.divf %14, %15 : vector<10x1xf32>
      %17 = vector.broadcast %16 : vector<10x1xf32> to vector<10x32xf32>
      %18 = arith.subf %12, %17 : vector<10x32xf32>
      %19 = arith.mulf %18, %18 : vector<10x32xf32>
      %cst_12 = arith.constant dense<0.000000e+00> : vector<10xf32>
      %20 = vector.multi_reduction <add>, %19, %cst_12 [1] : vector<10x32xf32> to vector<10xf32>
      %21 = vector.shape_cast %20 : vector<10xf32> to vector<10x1xf32>
      %cst_13 = arith.constant 3.200000e+01 : f32
      %22 = vector.broadcast %cst_13 : f32 to vector<10x1xf32>
      %23 = arith.divf %21, %22 : vector<10x1xf32>
      %24 = vector.broadcast %16 : vector<10x1xf32> to vector<10x32xf32>
      %25 = arith.subf %12, %24 : vector<10x32xf32>
      %cst_14 = arith.constant 9.99999974E-6 : f32
      %26 = vector.broadcast %cst_14 : f32 to vector<10x1xf32>
      %27 = arith.addf %23, %26 : vector<10x1xf32>
      %28 = math.rsqrt %27 : vector<10x1xf32>
      %29 = vector.broadcast %28 : vector<10x1xf32> to vector<10x32xf32>
      %30 = arith.mulf %25, %29 : vector<10x32xf32>
      %c0_15 = arith.constant 0 : index
      %c0_16 = arith.constant 0 : index
      %31 = vector.load %arg5[%c0_15, %c0_16] : memref<1x32xf32, #tpu.memory_space<vmem>>, vector<1x32xf32>
      %32 = vector.broadcast %31 : vector<1x32xf32> to vector<10x32xf32>
      %33 = arith.mulf %30, %32 : vector<10x32xf32>
      %c0_17 = arith.constant 0 : index
      %c0_18 = arith.constant 0 : index
      %34 = vector.load %arg6[%c0_17, %c0_18] : memref<1x32xf32, #tpu.memory_space<vmem>>, vector<1x32xf32>
      %35 = vector.broadcast %34 : vector<1x32xf32> to vector<10x32xf32>
      %36 = arith.addf %33, %35 : vector<10x32xf32>
      %37 = arith.truncf %36 : vector<10x32xf32> to vector<10x32xbf16>
      %c0_19 = arith.constant 0 : index
      %c0_20 = arith.constant 0 : index
      %38 = vector.load %arg8[%c0_19, %c0_20] : memref<10x32xbf16, #tpu.memory_space<vmem>>, vector<10x32xbf16>
      tpu.vector_store %arg8[%c0_19, %c0_20], %37 {strides = array<i32>} : memref<10x32xbf16, #tpu.memory_space<vmem>>, vector<10x32xbf16>,
    } else {
    }
    %c0 = arith.constant 0 : index
    %c0_1 = arith.constant 0 : index
    %3 = vector.load %arg8[%c0, %c0_1] : memref<10x32xbf16, #tpu.memory_space<vmem>>, vector<10x32xbf16>
    %c0_2 = arith.constant 0 : index
    %c0_3 = arith.constant 0 : index
    %4 = vector.load %arg3[%c0_2, %c0_3] : memref<32x96xbf16, #tpu.memory_space<vmem>>, vector<32x96xbf16>
    %cst = arith.constant dense<0.000000e+00> : vector<10x96xf32>
    %5 = tpu.matmul %3, %4, %cst {dimension_numbers = #tpu.dot_dimension_numbers<[1], [0], [0], [1], [0, 0, 1, 1], [], []>} : vector<10x32xbf16>, vector<32x96xbf16>, vector<10x96xf32> -> vector<10x96xf32>
    %c0_4 = arith.constant 0 : index
    %c0_5 = arith.constant 0 : index
    %6 = vector.load %arg4[%c0_4, %c0_5] : memref<1x96xf32, #tpu.memory_space<vmem>>, vector<1x96xf32>
    %7 = vector.broadcast %6 : vector<1x96xf32> to vector<10x96xf32>
    %8 = arith.addf %5, %7 : vector<10x96xf32>
    %9 = arith.truncf %8 : vector<10x96xf32> to vector<10x96xbf16>
    %c0_6 = arith.constant 0 : index
    %c0_7 = arith.constant 0 : index
    %10 = vector.load %arg7[%c0_6, %c0_7] : memref<10x96xbf16, #tpu.memory_space<vmem>>, vector<10x96xbf16>
    tpu.vector_store %arg7[%c0_6, %c0_7], %9 {strides = array<i32>} : memref<10x96xbf16, #tpu.memory_space<vmem>>, vector<10x96xbf16>,
    return
  }
  func.func @transform_0(%arg0: i32, %arg1: i32) -> (i32, i32) {
    %c0_i32 = arith.constant 0 : i32
    %c0_i32_0 = arith.constant 0 : i32
    return %arg0, %c0_i32 : i32, i32
  }
  func.func @transform_1(%arg0: i32, %arg1: i32) -> (i32, i32) {
    %c0_i32 = arith.constant 0 : i32
    %c0_i32_0 = arith.constant 0 : i32
    return %c0_i32, %arg1 : i32, i32
  }
  func.func @transform_2(%arg0: i32, %arg1: i32) -> (i32, i32) {
    %c0_i32 = arith.constant 0 : i32
    %c0_i32_0 = arith.constant 0 : i32
    return %c0_i32, %arg1 : i32, i32
  }
  func.func @transform_3(%arg0: i32, %arg1: i32) -> (i32, i32) {
    %c0_i32 = arith.constant 0 : i32
    %c0_i32_0 = arith.constant 0 : i32
    %c0_i32_1 = arith.constant 0 : i32
    return %c0_i32, %c0_i32_0 : i32, i32
  }
  func.func @transform_4(%arg0: i32, %arg1: i32) -> (i32, i32) {
    %c0_i32 = arith.constant 0 : i32
    %c0_i32_0 = arith.constant 0 : i32
    %c0_i32_1 = arith.constant 0 : i32
    return %c0_i32, %c0_i32_0 : i32, i32
  }
  func.func @transform_5(%arg0: i32, %arg1: i32) -> (i32, i32) {
    %c0_i32 = arith.constant 0 : i32
    return %arg0, %arg1 : i32, i32
  }
}

module attributes {stable_mosaic.version = 11 : i64} {
  func.func @kernel(%arg0: i32, %arg1: i32, %arg2: memref<10x32xbf16, #tpu.memory_space<vmem>>, %arg3: memref<32x32xbf16, #tpu.memory_space<vmem>>, %arg4: memref<1x32xf32, #tpu.memory_space<vmem>>, %arg5: memref<10x32xbf16, #tpu.memory_space<vmem>>, %arg6: memref<10x32xbf16, #tpu.memory_space<vmem>>) attributes {dimension_semantics = [#tpu.dimension_semantics<parallel>, #tpu.dimension_semantics<parallel>], iteration_bounds = array<i64: 1, 1>, scalar_prefetch = 0 : i64, scratch_operands = 0 : i64, tpu.core_type = #tpu.core_type<tc>, window_params = [{transform_indices = @transform_0, window_bounds = array<i64: 10, 32>}, {transform_indices = @transform_1, window_bounds = array<i64: 32, 32>}, {transform_indices = @transform_2, window_bounds = array<i64: 1, 32>}, {transform_indices = @transform_3, window_bounds = array<i64: 10, 32>}, {transform_indices = @transform_4, window_bounds = array<i64: 10, 32>}]} {
    %c0 = arith.constant 0 : index
    %c0_0 = arith.constant 0 : index
    %0 = vector.load %arg2[%c0, %c0_0] : memref<10x32xbf16, #tpu.memory_space<vmem>>, vector<10x32xbf16>
    %c0_1 = arith.constant 0 : index
    %c0_2 = arith.constant 0 : index
    %1 = vector.load %arg3[%c0_1, %c0_2] : memref<32x32xbf16, #tpu.memory_space<vmem>>, vector<32x32xbf16>
    %cst = arith.constant dense<0.000000e+00> : vector<10x32xf32>
    %2 = tpu.matmul %0, %1, %cst {dimension_numbers = #tpu.dot_dimension_numbers<[1], [0], [0], [1], [0, 0, 1, 1], [], []>} : vector<10x32xbf16>, vector<32x32xbf16>, vector<10x32xf32> -> vector<10x32xf32>
    %c0_3 = arith.constant 0 : index
    %c0_4 = arith.constant 0 : index
    %3 = vector.load %arg4[%c0_3, %c0_4] : memref<1x32xf32, #tpu.memory_space<vmem>>, vector<1x32xf32>
    %4 = vector.broadcast %3 : vector<1x32xf32> to vector<10x32xf32>
    %5 = arith.addf %2, %4 : vector<10x32xf32>
    %c0_5 = arith.constant 0 : index
    %c0_6 = arith.constant 0 : index
    %6 = vector.load %arg5[%c0_5, %c0_6] : memref<10x32xbf16, #tpu.memory_space<vmem>>, vector<10x32xbf16>
    %7 = arith.extf %6 : vector<10x32xbf16> to vector<10x32xf32>
    %8 = arith.addf %5, %7 : vector<10x32xf32>
    %9 = arith.truncf %8 : vector<10x32xf32> to vector<10x32xbf16>
    %c0_7 = arith.constant 0 : index
    %c0_8 = arith.constant 0 : index
    %10 = vector.load %arg6[%c0_7, %c0_8] : memref<10x32xbf16, #tpu.memory_space<vmem>>, vector<10x32xbf16>
    tpu.vector_store %arg6[%c0_7, %c0_8], %9 {strides = array<i32>} : memref<10x32xbf16, #tpu.memory_space<vmem>>, vector<10x32xbf16>,
    return
  }
  func.func @transform_0(%arg0: i32, %arg1: i32) -> (i32, i32) {
    %c0_i32 = arith.constant 0 : i32
    %c0_i32_0 = arith.constant 0 : i32
    return %arg0, %c0_i32 : i32, i32
  }
  func.func @transform_1(%arg0: i32, %arg1: i32) -> (i32, i32) {
    %c0_i32 = arith.constant 0 : i32
    %c0_i32_0 = arith.constant 0 : i32
    return %c0_i32, %arg1 : i32, i32
  }
  func.func @transform_2(%arg0: i32, %arg1: i32) -> (i32, i32) {
    %c0_i32 = arith.constant 0 : i32
    %c0_i32_0 = arith.constant 0 : i32
    return %c0_i32, %arg1 : i32, i32
  }
  func.func @transform_3(%arg0: i32, %arg1: i32) -> (i32, i32) {
    %c0_i32 = arith.constant 0 : i32
    return %arg0, %arg1 : i32, i32
  }
  func.func @transform_4(%arg0: i32, %arg1: i32) -> (i32, i32) {
    %c0_i32 = arith.constant 0 : i32
    return %arg0, %arg1 : i32, i32
  }
}

module attributes {stable_mosaic.version = 11 : i64} {
  func.func @kernel(%arg0: i32, %arg1: i32, %arg2: memref<10x32xbf16, #tpu.memory_space<vmem>>, %arg3: memref<32x128xbf16, #tpu.memory_space<vmem>>, %arg4: memref<1x128xf32, #tpu.memory_space<vmem>>, %arg5: memref<1x32xf32, #tpu.memory_space<vmem>>, %arg6: memref<1x32xf32, #tpu.memory_space<vmem>>, %arg7: memref<10x128xbf16, #tpu.memory_space<vmem>>, %arg8: memref<10x32xbf16, #tpu.memory_space<vmem>>) attributes {dimension_semantics = [#tpu.dimension_semantics<parallel>, #tpu.dimension_semantics<arbitrary>], iteration_bounds = array<i64: 1, 1>, scalar_prefetch = 0 : i64, scratch_operands = 1 : i64, tpu.core_type = #tpu.core_type<tc>, window_params = [{transform_indices = @transform_0, window_bounds = array<i64: 10, 32>}, {transform_indices = @transform_1, window_bounds = array<i64: 32, 128>}, {transform_indices = @transform_2, window_bounds = array<i64: 1, 128>}, {pipeline_mode = #tpu.pipeline_mode<synchronous>, transform_indices = @transform_3, window_bounds = array<i64: 1, 32>}, {pipeline_mode = #tpu.pipeline_mode<synchronous>, transform_indices = @transform_4, window_bounds = array<i64: 1, 32>}, {transform_indices = @transform_5, window_bounds = array<i64: 10, 128>}]} {
    %c0_i32 = arith.constant 0 : i32
    %0 = arith.cmpi eq, %arg1, %c0_i32 : i32
    %1 = arith.extui %0 : i1 to i32
    %c0_i32_0 = arith.constant 0 : i32
    %2 = arith.cmpi ne, %1, %c0_i32_0 : i32
    scf.if %2 {
      %c0_10 = arith.constant 0 : index
      %c0_11 = arith.constant 0 : index
      %19 = vector.load %arg2[%c0_10, %c0_11] : memref<10x32xbf16, #tpu.memory_space<vmem>>, vector<10x32xbf16>
      %20 = arith.extf %19 : vector<10x32xbf16> to vector<10x32xf32>
      %cst_12 = arith.constant dense<0.000000e+00> : vector<10xf32>
      %21 = vector.multi_reduction <add>, %20, %cst_12 [1] : vector<10x32xf32> to vector<10xf32>
      %22 = vector.shape_cast %21 : vector<10xf32> to vector<10x1xf32>
      %cst_13 = arith.constant 3.200000e+01 : f32
      %23 = vector.broadcast %cst_13 : f32 to vector<10x1xf32>
      %24 = arith.divf %22, %23 : vector<10x1xf32>
      %25 = vector.broadcast %24 : vector<10x1xf32> to vector<10x32xf32>
      %26 = arith.subf %20, %25 : vector<10x32xf32>
      %27 = arith.mulf %26, %26 : vector<10x32xf32>
      %cst_14 = arith.constant dense<0.000000e+00> : vector<10xf32>
      %28 = vector.multi_reduction <add>, %27, %cst_14 [1] : vector<10x32xf32> to vector<10xf32>
      %29 = vector.shape_cast %28 : vector<10xf32> to vector<10x1xf32>
      %cst_15 = arith.constant 3.200000e+01 : f32
      %30 = vector.broadcast %cst_15 : f32 to vector<10x1xf32>
      %31 = arith.divf %29, %30 : vector<10x1xf32>
      %32 = vector.broadcast %24 : vector<10x1xf32> to vector<10x32xf32>
      %33 = arith.subf %20, %32 : vector<10x32xf32>
      %cst_16 = arith.constant 9.99999974E-6 : f32
      %34 = vector.broadcast %cst_16 : f32 to vector<10x1xf32>
      %35 = arith.addf %31, %34 : vector<10x1xf32>
      %36 = math.rsqrt %35 : vector<10x1xf32>
      %37 = vector.broadcast %36 : vector<10x1xf32> to vector<10x32xf32>
      %38 = arith.mulf %33, %37 : vector<10x32xf32>
      %c0_17 = arith.constant 0 : index
      %c0_18 = arith.constant 0 : index
      %39 = vector.load %arg5[%c0_17, %c0_18] : memref<1x32xf32, #tpu.memory_space<vmem>>, vector<1x32xf32>
      %40 = vector.broadcast %39 : vector<1x32xf32> to vector<10x32xf32>
      %41 = arith.mulf %38, %40 : vector<10x32xf32>
      %c0_19 = arith.constant 0 : index
      %c0_20 = arith.constant 0 : index
      %42 = vector.load %arg6[%c0_19, %c0_20] : memref<1x32xf32, #tpu.memory_space<vmem>>, vector<1x32xf32>
      %43 = vector.broadcast %42 : vector<1x32xf32> to vector<10x32xf32>
      %44 = arith.addf %41, %43 : vector<10x32xf32>
      %45 = arith.truncf %44 : vector<10x32xf32> to vector<10x32xbf16>
      %c0_21 = arith.constant 0 : index
      %c0_22 = arith.constant 0 : index
      %46 = vector.load %arg8[%c0_21, %c0_22] : memref<10x32xbf16, #tpu.memory_space<vmem>>, vector<10x32xbf16>
      tpu.vector_store %arg8[%c0_21, %c0_22], %45 {strides = array<i32>} : memref<10x32xbf16, #tpu.memory_space<vmem>>, vector<10x32xbf16>,
    } else {
    }
    %c0 = arith.constant 0 : index
    %c0_1 = arith.constant 0 : index
    %3 = vector.load %arg8[%c0, %c0_1] : memref<10x32xbf16, #tpu.memory_space<vmem>>, vector<10x32xbf16>
    %c0_2 = arith.constant 0 : index
    %c0_3 = arith.constant 0 : index
    %4 = vector.load %arg3[%c0_2, %c0_3] : memref<32x128xbf16, #tpu.memory_space<vmem>>, vector<32x128xbf16>
    %cst = arith.constant dense<0.000000e+00> : vector<10x128xf32>
    %5 = tpu.matmul %3, %4, %cst {dimension_numbers = #tpu.dot_dimension_numbers<[1], [0], [0], [1], [0, 0, 1, 1], [], []>} : vector<10x32xbf16>, vector<32x128xbf16>, vector<10x128xf32> -> vector<10x128xf32>
    %c0_4 = arith.constant 0 : index
    %c0_5 = arith.constant 0 : index
    %6 = vector.load %arg4[%c0_4, %c0_5] : memref<1x128xf32, #tpu.memory_space<vmem>>, vector<1x128xf32>
    %7 = vector.broadcast %6 : vector<1x128xf32> to vector<10x128xf32>
    %8 = arith.addf %5, %7 : vector<10x128xf32>
    %cst_6 = arith.constant 1.702000e+00 : f32
    %9 = vector.broadcast %cst_6 : f32 to vector<10x128xf32>
    %10 = arith.mulf %9, %8 : vector<10x128xf32>
    %11 = arith.negf %10 : vector<10x128xf32>
    %12 = math.exp %11 : vector<10x128xf32>
    %cst_7 = arith.constant 1.000000e+00 : f32
    %13 = vector.broadcast %cst_7 : f32 to vector<10x128xf32>
    %14 = arith.addf %13, %12 : vector<10x128xf32>
    %15 = arith.divf %13, %14 : vector<10x128xf32>
    %16 = arith.mulf %8, %15 : vector<10x128xf32>
    %17 = arith.truncf %16 : vector<10x128xf32> to vector<10x128xbf16>
    %c0_8 = arith.constant 0 : index
    %c0_9 = arith.constant 0 : index
    %18 = vector.load %arg7[%c0_8, %c0_9] : memref<10x128xbf16, #tpu.memory_space<vmem>>, vector<10x128xbf16>
    tpu.vector_store %arg7[%c0_8, %c0_9], %17 {strides = array<i32>} : memref<10x128xbf16, #tpu.memory_space<vmem>>, vector<10x128xbf16>,
    return
  }
  func.func @transform_0(%arg0: i32, %arg1: i32) -> (i32, i32) {
    %c0_i32 = arith.constant 0 : i32
    %c0_i32_0 = arith.constant 0 : i32
    return %arg0, %c0_i32 : i32, i32
  }
  func.func @transform_1(%arg0: i32, %arg1: i32) -> (i32, i32) {
    %c0_i32 = arith.constant 0 : i32
    %c0_i32_0 = arith.constant 0 : i32
    return %c0_i32, %arg1 : i32, i32
  }
  func.func @transform_2(%arg0: i32, %arg1: i32) -> (i32, i32) {
    %c0_i32 = arith.constant 0 : i32
    %c0_i32_0 = arith.constant 0 : i32
    return %c0_i32, %arg1 : i32, i32
  }
  func.func @transform_3(%arg0: i32, %arg1: i32) -> (i32, i32) {
    %c0_i32 = arith.constant 0 : i32
    %c0_i32_0 = arith.constant 0 : i32
    %c0_i32_1 = arith.constant 0 : i32
    return %c0_i32, %c0_i32_0 : i32, i32
  }
  func.func @transform_4(%arg0: i32, %arg1: i32) -> (i32, i32) {
    %c0_i32 = arith.constant 0 : i32
    %c0_i32_0 = arith.constant 0 : i32
    %c0_i32_1 = arith.constant 0 : i32
    return %c0_i32, %c0_i32_0 : i32, i32
  }
  func.func @transform_5(%arg0: i32, %arg1: i32) -> (i32, i32) {
    %c0_i32 = arith.constant 0 : i32
    return %arg0, %arg1 : i32, i32
  }
}

module attributes {stable_mosaic.version = 11 : i64} {
  func.func @kernel(%arg0: i32, %arg1: i32, %arg2: memref<10x128xbf16, #tpu.memory_space<vmem>>, %arg3: memref<128x32xbf16, #tpu.memory_space<vmem>>, %arg4: memref<1x32xf32, #tpu.memory_space<vmem>>, %arg5: memref<10x32xbf16, #tpu.memory_space<vmem>>, %arg6: memref<10x32xbf16, #tpu.memory_space<vmem>>) attributes {dimension_semantics = [#tpu.dimension_semantics<parallel>, #tpu.dimension_semantics<parallel>], iteration_bounds = array<i64: 1, 1>, scalar_prefetch = 0 : i64, scratch_operands = 0 : i64, tpu.core_type = #tpu.core_type<tc>, window_params = [{transform_indices = @transform_0, window_bounds = array<i64: 10, 128>}, {transform_indices = @transform_1, window_bounds = array<i64: 128, 32>}, {transform_indices = @transform_2, window_bounds = array<i64: 1, 32>}, {transform_indices = @transform_3, window_bounds = array<i64: 10, 32>}, {transform_indices = @transform_4, window_bounds = array<i64: 10, 32>}]} {
    %c0 = arith.constant 0 : index
    %c0_0 = arith.constant 0 : index
    %0 = vector.load %arg2[%c0, %c0_0] : memref<10x128xbf16, #tpu.memory_space<vmem>>, vector<10x128xbf16>
    %c0_1 = arith.constant 0 : index
    %c0_2 = arith.constant 0 : index
    %1 = vector.load %arg3[%c0_1, %c0_2] : memref<128x32xbf16, #tpu.memory_space<vmem>>, vector<128x32xbf16>
    %cst = arith.constant dense<0.000000e+00> : vector<10x32xf32>
    %2 = tpu.matmul %0, %1, %cst {dimension_numbers = #tpu.dot_dimension_numbers<[1], [0], [0], [1], [0, 0, 1, 1], [], []>} : vector<10x128xbf16>, vector<128x32xbf16>, vector<10x32xf32> -> vector<10x32xf32>
    %c0_3 = arith.constant 0 : index
    %c0_4 = arith.constant 0 : index
    %3 = vector.load %arg4[%c0_3, %c0_4] : memref<1x32xf32, #tpu.memory_space<vmem>>, vector<1x32xf32>
    %4 = vector.broadcast %3 : vector<1x32xf32> to vector<10x32xf32>
    %5 = arith.addf %2, %4 : vector<10x32xf32>
    %c0_5 = arith.constant 0 : index
    %c0_6 = arith.constant 0 : index
    %6 = vector.load %arg5[%c0_5, %c0_6] : memref<10x32xbf16, #tpu.memory_space<vmem>>, vector<10x32xbf16>
    %7 = arith.extf %6 : vector<10x32xbf16> to vector<10x32xf32>
    %8 = arith.addf %5, %7 : vector<10x32xf32>
    %9 = arith.truncf %8 : vector<10x32xf32> to vector<10x32xbf16>
    %c0_7 = arith.constant 0 : index
    %c0_8 = arith.constant 0 : index
    %10 = vector.load %arg6[%c0_7, %c0_8] : memref<10x32xbf16, #tpu.memory_space<vmem>>, vector<10x32xbf16>
    tpu.vector_store %arg6[%c0_7, %c0_8], %9 {strides = array<i32>} : memref<10x32xbf16, #tpu.memory_space<vmem>>, vector<10x32xbf16>,
    return
  }
  func.func @transform_0(%arg0: i32, %arg1: i32) -> (i32, i32) {
    %c0_i32 = arith.constant 0 : i32
    %c0_i32_0 = arith.constant 0 : i32
    return %arg0, %c0_i32 : i32, i32
  }
  func.func @transform_1(%arg0: i32, %arg1: i32) -> (i32, i32) {
    %c0_i32 = arith.constant 0 : i32
    %c0_i32_0 = arith.constant 0 : i32
    return %c0_i32, %arg1 : i32, i32
  }
  func.func @transform_2(%arg0: i32, %arg1: i32) -> (i32, i32) {
    %c0_i32 = arith.constant 0 : i32
    %c0_i32_0 = arith.constant 0 : i32
    return %c0_i32, %arg1 : i32, i32
  }
  func.func @transform_3(%arg0: i32, %arg1: i32) -> (i32, i32) {
    %c0_i32 = arith.constant 0 : i32
    return %arg0, %arg1 : i32, i32
  }
  func.func @transform_4(%arg0: i32, %arg1: i32) -> (i32, i32) {
    %c0_i32 = arith.constant 0 : i32
    return %arg0, %arg1 : i32, i32
  }
}

module attributes {stable_mosaic.version = 11 : i64} {
  func.func @_head_kernel(%arg0: memref<2x32xbf16, #tpu.memory_space<vmem>>, %arg1: memref<1x32xf32, #tpu.memory_space<vmem>>, %arg2: memref<1x32xf32, #tpu.memory_space<vmem>>, %arg3: memref<32x24xbf16, #tpu.memory_space<vmem>>, %arg4: memref<32x24xbf16, #tpu.memory_space<vmem>>, %arg5: memref<2x32xf32, #tpu.memory_space<vmem>>, %arg6: memref<2x24xf32, #tpu.memory_space<vmem>>, %arg7: memref<2x24xf32, #tpu.memory_space<vmem>>) attributes {dimension_semantics = [], scalar_prefetch = 0 : i64, scratch_operands = 0 : i64, tpu.core_type = #tpu.core_type<tc>} {
    %c0 = arith.constant 0 : index
    %c0_0 = arith.constant 0 : index
    %0 = vector.load %arg0[%c0, %c0_0] : memref<2x32xbf16, #tpu.memory_space<vmem>>, vector<2x32xbf16>
    %1 = arith.extf %0 : vector<2x32xbf16> to vector<2x32xf32>
    %cst = arith.constant dense<0.000000e+00> : vector<2xf32>
    %2 = vector.multi_reduction <add>, %1, %cst [1] : vector<2x32xf32> to vector<2xf32>
    %3 = vector.shape_cast %2 : vector<2xf32> to vector<2x1xf32>
    %cst_1 = arith.constant 3.200000e+01 : f32
    %4 = vector.broadcast %cst_1 : f32 to vector<2x1xf32>
    %5 = arith.divf %3, %4 : vector<2x1xf32>
    %6 = vector.broadcast %5 : vector<2x1xf32> to vector<2x32xf32>
    %7 = arith.subf %1, %6 : vector<2x32xf32>
    %8 = arith.mulf %7, %7 : vector<2x32xf32>
    %cst_2 = arith.constant dense<0.000000e+00> : vector<2xf32>
    %9 = vector.multi_reduction <add>, %8, %cst_2 [1] : vector<2x32xf32> to vector<2xf32>
    %10 = vector.shape_cast %9 : vector<2xf32> to vector<2x1xf32>
    %cst_3 = arith.constant 3.200000e+01 : f32
    %11 = vector.broadcast %cst_3 : f32 to vector<2x1xf32>
    %12 = arith.divf %10, %11 : vector<2x1xf32>
    %13 = vector.broadcast %5 : vector<2x1xf32> to vector<2x32xf32>
    %14 = arith.subf %1, %13 : vector<2x32xf32>
    %cst_4 = arith.constant 9.99999974E-6 : f32
    %15 = vector.broadcast %cst_4 : f32 to vector<2x1xf32>
    %16 = arith.addf %12, %15 : vector<2x1xf32>
    %17 = math.rsqrt %16 : vector<2x1xf32>
    %18 = vector.broadcast %17 : vector<2x1xf32> to vector<2x32xf32>
    %19 = arith.mulf %14, %18 : vector<2x32xf32>
    %c0_5 = arith.constant 0 : index
    %c0_6 = arith.constant 0 : index
    %20 = vector.load %arg1[%c0_5, %c0_6] : memref<1x32xf32, #tpu.memory_space<vmem>>, vector<1x32xf32>
    %21 = vector.broadcast %20 : vector<1x32xf32> to vector<2x32xf32>
    %22 = arith.mulf %19, %21 : vector<2x32xf32>
    %c0_7 = arith.constant 0 : index
    %c0_8 = arith.constant 0 : index
    %23 = vector.load %arg2[%c0_7, %c0_8] : memref<1x32xf32, #tpu.memory_space<vmem>>, vector<1x32xf32>
    %24 = vector.broadcast %23 : vector<1x32xf32> to vector<2x32xf32>
    %25 = arith.addf %22, %24 : vector<2x32xf32>
    %c0_9 = arith.constant 0 : index
    %c0_10 = arith.constant 0 : index
    %26 = vector.load %arg5[%c0_9, %c0_10] : memref<2x32xf32, #tpu.memory_space<vmem>>, vector<2x32xf32>
    tpu.vector_store %arg5[%c0_9, %c0_10], %25 {strides = array<i32>} : memref<2x32xf32, #tpu.memory_space<vmem>>, vector<2x32xf32>,
    %27 = arith.truncf %25 : vector<2x32xf32> to vector<2x32xbf16>
    %c0_11 = arith.constant 0 : index
    %c0_12 = arith.constant 0 : index
    %28 = vector.load %arg3[%c0_11, %c0_12] : memref<32x24xbf16, #tpu.memory_space<vmem>>, vector<32x24xbf16>
    %cst_13 = arith.constant dense<0.000000e+00> : vector<2x24xf32>
    %29 = tpu.matmul %27, %28, %cst_13 {dimension_numbers = #tpu.dot_dimension_numbers<[1], [0], [0], [1], [0, 0, 1, 1], [], []>} : vector<2x32xbf16>, vector<32x24xbf16>, vector<2x24xf32> -> vector<2x24xf32>
    %30 = arith.mulf %29, %29 : vector<2x24xf32>
    %cst_14 = arith.constant dense<0.000000e+00> : vector<2xf32>
    %31 = vector.multi_reduction <add>, %30, %cst_14 [1] : vector<2x24xf32> to vector<2xf32>
    %32 = vector.shape_cast %31 : vector<2xf32> to vector<2x1xf32>
    %cst_15 = arith.constant 1.000000e-24 : f32
    %33 = vector.broadcast %cst_15 : f32 to vector<2x1xf32>
    %34 = arith.maximumf %32, %33 : vector<2x1xf32>
    %35 = math.rsqrt %34 : vector<2x1xf32>
    %36 = vector.broadcast %35 : vector<2x1xf32> to vector<2x24xf32>
    %37 = arith.mulf %29, %36 : vector<2x24xf32>
    %c0_16 = arith.constant 0 : index
    %c0_17 = arith.constant 0 : index
    %38 = vector.load %arg6[%c0_16, %c0_17] : memref<2x24xf32, #tpu.memory_space<vmem>>, vector<2x24xf32>
    tpu.vector_store %arg6[%c0_16, %c0_17], %37 {strides = array<i32>} : memref<2x24xf32, #tpu.memory_space<vmem>>, vector<2x24xf32>,
    %c0_18 = arith.constant 0 : index
    %c0_19 = arith.constant 0 : index
    %39 = vector.load %arg4[%c0_18, %c0_19] : memref<32x24xbf16, #tpu.memory_space<vmem>>, vector<32x24xbf16>
    %cst_20 = arith.constant dense<0.000000e+00> : vector<2x24xf32>
    %40 = tpu.matmul %27, %39, %cst_20 {dimension_numbers = #tpu.dot_dimension_numbers<[1], [0], [0], [1], [0, 0, 1, 1], [], []>} : vector<2x32xbf16>, vector<32x24xbf16>, vector<2x24xf32> -> vector<2x24xf32>
    %41 = arith.mulf %40, %40 : vector<2x24xf32>
    %cst_21 = arith.constant dense<0.000000e+00> : vector<2xf32>
    %42 = vector.multi_reduction <add>, %41, %cst_21 [1] : vector<2x24xf32> to vector<2xf32>
    %43 = vector.shape_cast %42 : vector<2xf32> to vector<2x1xf32>
    %cst_22 = arith.constant 1.000000e-24 : f32
    %44 = vector.broadcast %cst_22 : f32 to vector<2x1xf32>
    %45 = arith.maximumf %43, %44 : vector<2x1xf32>
    %46 = math.rsqrt %45 : vector<2x1xf32>
    %47 = vector.broadcast %46 : vector<2x1xf32> to vector<2x24xf32>
    %48 = arith.mulf %40, %47 : vector<2x24xf32>
    %c0_23 = arith.constant 0 : index
    %c0_24 = arith.constant 0 : index
    %49 = vector.load %arg7[%c0_23, %c0_24] : memref<2x24xf32, #tpu.memory_space<vmem>>, vector<2x24xf32>
    tpu.vector_store %arg7[%c0_23, %c0_24], %48 {strides = array<i32>} : memref<2x24xf32, #tpu.memory_space<vmem>>, vector<2x24xf32>,
    return
  }
}

</mosaic_0001>

<bundles_post_ra>
// kernel: _lambda_.14
= control target key start
LH: loop header
LB: loop body
LE: loop exit
PB: predicated region body
PF: predicated region fallthrough
CT: control target
= control target key end

     0   :  { %vm16_vm0 = vcmask 261120   ;;  %vm20_vm1 = vcmask 254976   ;;  %vm71_vm2 = vcmask 257024   ;;  %vm73_vm3 = vcmask 253952   ;;  %s127_s0 = inlined_call_operand.vmem [shape: f32[10,32], index: 0, kind: input, shape index: {}]   ;;  %s128_s1 = inlined_call_operand.vmem [shape: f32[1,32], index: 1, kind: input, shape index: {}]   ;;  %s129_s2 = inlined_call_operand.vmem [shape: f32[1,32], index: 2, kind: input, shape index: {}]   ;;  %s130_s3 = inlined_call_operand.vmem [shape: bf16[10,32], index: 3, kind: output, shape index: {}]  }
   0x1   :  { %v14_v0 = vld [vmem:[%s127_s0] sm:$0xff]  ;;  %v15_v1 = vld [vmem:[%s127_s0 + $0x8] sm:$0x3] }
   0x2   :  { %v17_v2 = vsel %vm16_vm0, %v14_v0, 0.0  ;;  %v21_v3 = vsel %vm20_vm1, %v15_v1, 0.0  ;;  %v79_v21 = vld [vmem:[%s128_s1] ss:$0 sm:$0xff] }
   0x3   :  { %18 = vadd.xlane.f32.xlu0 %v17_v2  ;;  %v80_v23 = vld [vmem:[%s129_s2] ss:$0 sm:$0xff] }
   0x7   :  { %22 = vadd.xlane.f32.xlu0 %v21_v3 }
  0x90   :  { %v19_v4 = vpop.xlane.xlu0 %18 }
  0x91   :  { %v25_v5 = vmul.f32 0.03125, %v19_v4 }
  0x93   :  { %v27_v6 = vsub.f32 %v14_v0, %v25_v5 }
  0x94   :  { %v23_v7 = vpop.xlane.xlu0 %22 }
  0x95   :  { %v26_v8 = vmul.f32 0.03125, %v23_v7  ;;  %v29_v9 = vmul.f32 %v27_v6, %v27_v6 }
  0x97   :  { %v28_v10 = vsub.f32 %v15_v1, %v26_v8  ;;  %v31_v11 = vsel %vm16_vm0, %v29_v9, 0.0 }
  0x98   :  { %32 = vadd.xlane.f32.xlu1 %v31_v11 }
  0x99   :  { %v30_v12 = vmul.f32 %v28_v10, %v28_v10 }
  0x9b   :  { %v34_v13 = vsel %vm20_vm1, %v30_v12, 0.0 }
  0x9c   :  { %35 = vadd.xlane.f32.xlu1 %v34_v13 }
 0x125   :  { %v33_v14 = vpop.xlane.xlu1 %32 }
 0x126   :  { %v37_v15 = vmul.f32 0.03125, %v33_v14 }
 0x128   :  { %v39_v16 = vadd.f32 1e-05, %v37_v15 }
 0x129   :  { %v36_v17 = vpop.xlane.xlu1 %35 }
 0x12a   :  { %85 = vrsqrt.f32 %v39_v16  ;;  %v38_v18 = vmul.f32 0.03125, %v36_v17 }
 0x12c   :  { %v40_v19 = vadd.f32 1e-05, %v38_v18 }
 0x12e   :  { %87 = vrsqrt.f32 %v40_v19 }
 0x134   :  { %v86_v20 = vpop.eup %85 }
 0x135   :  { %v43_v22 = vmul.f32 %v86_v20, %v27_v6 }
 0x137   :  { %v52_v24 = vmul.f32 %v79_v21, %v43_v22 }
 0x138   :  { %v88_v25 = vpop.eup %87 }
 0x139   :  { %v61_v26 = vadd.f32 %v80_v23, %v52_v24  ;;  %v44_v27 = vmul.f32 %v88_v25, %v28_v10 }
 0x13b   :  { %v83_v28 = vpack.c.bf16 %v61_v26, %v61_v26  ;;  %v53_v29 = vmul.f32 %v79_v21, %v44_v27 }
 0x13d   :  { %72 = vst.msk [vmem:[%s130_s3] sm:$0xf] %vm71_vm2, %v83_v28  ;;  %v62_v30 = vadd.f32 %v80_v23, %v53_v29 }
 0x13f   :  { %v84_v31 = vpack.c.bf16 %v62_v30, %v62_v30 }
 0x141   :  { %74 = vst.msk [vmem:[%s130_s3 + $0x4] sm:$0x1] %vm73_vm3, %v84_v31 }

// kernel: _lambda_.15
= control target key start
LH: loop header
LB: loop body
LE: loop exit
PB: predicated region body
PF: predicated region fallthrough
CT: control target
= control target key end

     0   :  { %vm29_vm0 = vcmask 261120   ;;  %vm33_vm1 = vcmask 254976   ;;  %v214_v17 = vmov 0.0   ;;  %vm215_vm2 = vmmov 0   ;;  %s276_s0 = inlined_call_operand.vmem [shape: bf16[10,32], index: 0, kind: input, shape index: {}]   ;;  %s277_s1 = inlined_call_operand.vmem [shape: bf16[32,96], index: 1, kind: input, shape index: {}]   ;;  %s278_s3 = inlined_call_operand.vmem [shape: f32[1,32], index: 3, kind: input, shape index: {}]   ;;  %s279_s4 = inlined_call_operand.vmem [shape: f32[1,32], index: 4, kind: input, shape index: {}]   ;;  %s280_s2 = inlined_call_operand.vmem [shape: f32[1,96], index: 2, kind: input, shape index: {}]   ;;  %s281_s5 = inlined_call_operand.vmem [shape: bf16[10,96], index: 5, kind: output, shape index: {}]  }
   0x1   :  { %v25_v0 = vld [vmem:[%s276_s0] sm:$0xf]  ;;  %v26_v1 = vld [vmem:[%s276_s0 + $0x4] sm:$0x1]  ;;  %197 = vmatprep.subr.bf16.mxu0 %v214_v17  ;;  %v208_v18 = vld [vmem:[%s277_s1 + $0x8] sm:$0xff]   ;;  %201 = vmatprep.mubr.msk.bf16.mxu0 %vm215_vm2, %v214_v17  ;;  %vm84_vm3 = vcmask 257024  }
   0x2   :  { %v27_v2 = vunpack.c.l.bf16 %v25_v0  ;;  %v28_v3 = vunpack.c.l.bf16 %v26_v1  ;;  %v207_v16 = vld [vmem:[%s277_s1] sm:$0xff]   ;;  %vm86_vm4 = vcmask 253952   ;;  %vm171_vm5 = vcmask 781312  }
   0x3   :  { %198 = vmatpush3.bf16.msra.mxu0 %v207_v16  ;;  %v179_v26 = vld [vmem:[%s278_s3] ss:$0 sm:$0xff]  ;;  %vm173_vm6 = vcmask 778240  }
   0x4   :  { %v30_v4 = vsel %vm29_vm0, %v27_v2, 0.0  ;;  %v34_v5 = vsel %vm33_vm1, %v28_v3, 0.0  ;;  %199 = vmatprep.subr.bf16.mxu0 %v214_v17  ;;  %v180_v28 = vld [vmem:[%s279_s4] ss:$0 sm:$0xff] }
   0x5   :  { %31 = vadd.xlane.f32.xlu0 %v30_v4  ;;  %v183_v38 = vld [vmem:[%s280_s2] ss:$0 sm:$0xff] }
   0x7   :  { %200 = vmatpush3.bf16.msra.mxu0 %v208_v18 }
   0x9   :  { %35 = vadd.xlane.f32.xlu0 %v34_v5 }
  0x92   :  { %v32_v6 = vpop.xlane.xlu0 %31 }
  0x93   :  { %v38_v7 = vmul.f32 0.03125, %v32_v6 }
  0x95   :  { %v40_v8 = vsub.f32 %v27_v2, %v38_v7 }
  0x96   :  { %v36_v9 = vpop.xlane.xlu0 %35 }
  0x97   :  { %v39_v10 = vmul.f32 0.03125, %v36_v9  ;;  %v42_v11 = vmul.f32 %v40_v8, %v40_v8 }
  0x99   :  { %v41_v12 = vsub.f32 %v28_v3, %v39_v10  ;;  %v44_v13 = vsel %vm29_vm0, %v42_v11, 0.0 }
  0x9a   :  { %45 = vadd.xlane.f32.xlu1 %v44_v13 }
  0x9b   :  { %v43_v14 = vmul.f32 %v41_v12, %v41_v12 }
  0x9d   :  { %v47_v15 = vsel %vm33_vm1, %v43_v14, 0.0 }
  0x9e   :  { %48 = vadd.xlane.f32.xlu1 %v47_v15 }
 0x127   :  { %v46_v19 = vpop.xlane.xlu1 %45 }
 0x128   :  { %v50_v20 = vmul.f32 0.03125, %v46_v19 }
 0x12a   :  { %v52_v21 = vadd.f32 1e-05, %v50_v20 }
 0x12b   :  { %v49_v22 = vpop.xlane.xlu1 %48 }
 0x12c   :  { %210 = vrsqrt.f32 %v52_v21  ;;  %v51_v23 = vmul.f32 0.03125, %v49_v22 }
 0x12e   :  { %v53_v24 = vadd.f32 1e-05, %v51_v23 }
 0x130   :  { %212 = vrsqrt.f32 %v53_v24 }
 0x136   :  { %v211_v25 = vpop.eup %210 }
 0x137   :  { %v56_v27 = vmul.f32 %v211_v25, %v40_v8 }
 0x139   :  { %v65_v29 = vmul.f32 %v179_v26, %v56_v27 }
 0x13a   :  { %v213_v30 = vpop.eup %212 }
 0x13b   :  { %v74_v31 = vadd.f32 %v180_v28, %v65_v29  ;;  %v57_v32 = vmul.f32 %v213_v30, %v41_v12 }
 0x13d   :  { %v190_v33 = vpack.c.bf16 %v74_v31, %v74_v31  ;;  %v66_v34 = vmul.f32 %v179_v26, %v57_v32 }
 0x13f   :  { %85 = vst.msk [vmem:[#allocation2] sm:$0xf] %vm84_vm3, %v190_v33  ;;  %v75_v35 = vadd.f32 %v180_v28, %v66_v34 }
 0x141   :  { %v191_v36 = vpack.c.bf16 %v75_v35, %v75_v35 }
 0x143   :  { %87 = vst.msk [vmem:[#allocation2 + $0x4] sm:$0x1] %vm86_vm4, %v191_v36 }
 0x14a   :  { %v209_v37 = vld [vmem:[#allocation2] sm:$0x1f]  }
 0x14b   :  { %202 = vmatmul.mubr.msk.bf16.vlgmr.msra.gmra.mrb[0].mxu0 %vm29_vm0, %v209_v37 }
 0x21e   :  { %v156_v39 = vpop.f32.mrb[0].mxu0 }
 0x21f   :  { %v157_v40 = vadd.f32 %v183_v38, %v156_v39  ;;  %v203_v41 = vpop.f32.mrb[1].mxu0 }
 0x220   :  { %v159_v42 = vpop.f32.mrb[2].mxu0 }
 0x221   :  { %v192_v43 = vpack.c.bf16 %v157_v40, %v157_v40  ;;  %v160_v44 = vadd.f32 %v183_v38, %v159_v42  ;;  %v204_v45 = vpop.f32.mrb[3].mxu0 }
 0x223   :  { %172 = vst.msk [vmem:[%s281_s5] sm:$0xf] %vm171_vm5, %v192_v43  ;;  %v193_v46 = vpack.c.bf16 %v160_v44, %v160_v44 }
 0x225   :  { %174 = vst.msk [vmem:[%s281_s5 + $0x4] sm:$0x1] %vm173_vm6, %v193_v46 }

// kernel: _lambda_.13
= control target key start
LH: loop header
LB: loop body
LE: loop exit
PB: predicated region body
PF: predicated region fallthrough
CT: control target
= control target key end

     0   :  { %v199_v0 = vmov 0   ;;  %vm122_vm0 = vcmask 523264   ;;  %vm166_vm1 = vcmask 261120   ;;  %s268_s1 = inlined_call_operand.vmem [shape: bf16[192,32], index: 1, kind: input, shape index: {}]   ;;  %s269_s0 = inlined_call_operand.vmem [shape: f32[8,192], index: 0, kind: input, shape index: {}]   ;;  %s270_s2 = inlined_call_operand.vmem [shape: f32[1,32], index: 2, kind: input, shape index: {}]   ;;  %s271_s3 = inlined_call_operand.vmem [shape: f32[8,32], index: 3, kind: output, shape index: {}]  }
   0x1   :  { %126 = vmatprep.subr.bf16.mxu0 %v199_v0  ;;  %v187_v1 = vld [vmem:[%s268_s1] sm:$0xff]   ;;  %v188_v2 = vld [vmem:[%s268_s1 + $0x8] sm:$0xff]   ;;  %v189_v3 = vld [vmem:[%s268_s1 + $0x10] sm:$0xff]  }
   0x2   :  { %127 = vmatpush1.bf16.msra.mxu0 %v187_v1  ;;  %v190_v4 = vld [vmem:[%s268_s1 + $0x18] sm:$0xff]   ;;  %v16_v5 = vld [vmem:[%s269_s0 + $0x8] sm:$0xff]  ;;  %v191_v7 = vld [vmem:[%s268_s1 + $0x20] sm:$0xff]  }
   0x3   :  { %128 = vmatprep.subr.bf16.mxu0 %v199_v0  ;;  %v18_v6 = vpack.c.bf16 %v16_v5, %v16_v5  ;;  %v192_v8 = vld [vmem:[%s268_s1 + $0x28] sm:$0xff]   ;;  %v193_v9 = vld [vmem:[%s268_s1 + $0x30] sm:$0xff]   ;;  %v194_v10 = vld [vmem:[%s268_s1 + $0x38] sm:$0xff]  }
   0x4   :  { %v195_v11 = vld [vmem:[%s268_s1 + $0x40] sm:$0xff]   ;;  %v196_v12 = vld [vmem:[%s268_s1 + $0x48] sm:$0xff]   ;;  %v197_v13 = vld [vmem:[%s268_s1 + $0x50] sm:$0xff]  }
   0x5   :  { %185 = vmatprep.mubr.msk.bf16.mxu0 %vm122_vm0, %v18_v6  ;;  %v198_v14 = vld [vmem:[%s268_s1 + $0x58] sm:$0xff]   ;;  %v15_v15 = vld [vmem:[%s269_s0] sm:$0xff] }
   0x6   :  { %129 = vmatpush1.bf16.msra.mxu0 %v188_v2  ;;  %v17_v16 = vpack.c.bf16 %v15_v15, %v15_v15  ;;  %v172_v17 = vld [vmem:[%s270_s2] ss:$0 sm:$0xff] }
   0x7   :  { %130 = vmatprep.subr.bf16.mxu0 %v199_v0 }
   0xa   :  { %131 = vmatpush1.bf16.msra.mxu0 %v189_v3 }
   0xb   :  { %132 = vmatprep.subr.bf16.mxu0 %v199_v0 }
   0xe   :  { %133 = vmatpush1.bf16.msra.mxu0 %v190_v4 }
   0xf   :  { %134 = vmatprep.subr.bf16.mxu0 %v199_v0 }
  0x12   :  { %135 = vmatpush1.bf16.msra.mxu0 %v191_v7 }
  0x13   :  { %136 = vmatprep.subr.bf16.mxu0 %v199_v0 }
  0x16   :  { %137 = vmatpush1.bf16.msra.mxu0 %v192_v8 }
  0x17   :  { %138 = vmatprep.subr.bf16.mxu0 %v199_v0 }
  0x1a   :  { %139 = vmatpush1.bf16.msra.mxu0 %v193_v9 }
  0x1b   :  { %140 = vmatprep.subr.bf16.mxu0 %v199_v0 }
  0x1e   :  { %141 = vmatpush1.bf16.msra.mxu0 %v194_v10 }
  0x1f   :  { %142 = vmatprep.subr.bf16.mxu0 %v199_v0 }
  0x22   :  { %143 = vmatpush1.bf16.msra.mxu0 %v195_v11 }
  0x23   :  { %144 = vmatprep.subr.bf16.mxu0 %v199_v0 }
  0x26   :  { %145 = vmatpush1.bf16.msra.mxu0 %v196_v12 }
  0x27   :  { %146 = vmatprep.subr.bf16.mxu0 %v199_v0 }
  0x2a   :  { %147 = vmatpush1.bf16.msra.mxu0 %v197_v13 }
  0x2b   :  { %148 = vmatprep.subr.bf16.mxu0 %v199_v0 }
  0x2e   :  { %149 = vmatpush1.bf16.msra.mxu0 %v198_v14 }
  0x31   :  { %159 = vmatmul.mubr.bf16.vlgmr.msra.gmra.mrb[0].mxu0 %v17_v16 }
 0x104   :  { %v160_v18 = vpop.f32.mrb[0].mxu0 }
 0x105   :  { %v161_v19 = vadd.f32 %v172_v17, %v160_v18  ;;  %v162_v20 = vpop.f32.mrb[1].mxu0 }
 0x106   :  { %v163_v21 = vpop.f32.mrb[2].mxu0 }
 0x107   :  { %167 = vst.msk [vmem:[%s271_s3] sm:$0xff] %vm166_vm1, %v161_v19  ;;  %v164_v22 = vpop.f32.mrb[3].mxu0 }

// kernel: _lambda_.16
= control target key start
LH: loop header
LB: loop body
LE: loop exit
PB: predicated region body
PF: predicated region fallthrough
CT: control target
= control target key end

     0   :  { %s841_s6 = smov 0   ;;  %s950_s0 = inlined_call_operand.vmem [shape: bf16[2,5,96], index: 0, kind: input, shape index: {}]   ;;  %s951_s1 = inlined_call_operand.vmem [shape: bf16[2,5,32], index: 1, kind: output, shape index: {}]  }
   0x1 LB: > { %s670_s7 = sadd.s32 4294967295, %s812_s6   ;;  %p674_p0 = scmp.ge.s32.totalorder %s812_s6, 1  ;;  %s812_s6 = sphi %s841_s6, %s11_s6  }
   0x2   : > { %p86_p1 = scmp.lt.s32.totalorder %s812_s6, 3 }
   0x4   : > { %p87_p2 = pnand %p674_p0, %p86_p1 }
   0x5   : > { %p104_p3 = scmp.lt.s32.totalorder (!%p87_p2), %s670_s7, 1  ;;  %v814_v0 = vmov (!%p87_p2), 0.0   ;;  %vm815_vm0 = vmmov (!%p87_p2), 0   ;;  %s816_s12 = smov (!%p87_p2), 96   ;;  %vm119_vm1 = vcmask (!%p87_p2), 64512   ;;  %vm166_vm2 = vcmask (!%p87_p2), 36864  }
   0x6   : > { %90 = sbr.rel (%p87_p2) target bundleno = 1599 (0x63f), region = 24  ;;  %713 = vmatprep.subr.bf16.mxu0 (!%p87_p2), %v814_v0  ;;  %715 = vmatprep.mubr.msk.bf16.mxu0 (!%p87_p2), %vm815_vm0, %v814_v0  ;;  %s817_s13 = smov (!%p87_p2), 64   ;;  %vm185_vm3 = vcmask (!%p87_p2), 1041408   ;;  %vm186_vm4 = vcmask (!%p87_p2), 1042432   ;;  %v820_v13 = vmov (!%p87_p2), 65535   ;;  %vm181_vm5 = vcmask (!%p87_p2), 39936  }
   0x7   : > { %719 = vmatprep.subr.bf16.mxu1 (!%p87_p2), %v814_v0  ;;  %721 = vmatprep.mubr.msk.bf16.mxu1 (!%p87_p2), %vm815_vm0, %v814_v0  ;;  %s818_s14 = smov (!%p87_p2), 88   ;;  %s819_s15 = smov (!%p87_p2), 72   ;;  %v187_v14 = vsel (!%p87_p2), %vm185_vm3, 4294967295, %v820_v13  ;;  %vm233_vm6 = vcmask (!%p87_p2), 59392   ;;  %vm234_vm7 = vsmask.f32 (!%p87_p2), 2304 }
   0x8   : > { %v880_v15 = vsel (!%p87_p2), %vm186_vm4, %v187_v14, 0  ;;  %s821_s16 = smov (!%p87_p2), 120   ;;  %s822_s17 = smov (!%p87_p2), 80   ;;  %vm235_vm8 = vmand (!%p87_p2), %vm233_vm6, %vm234_vm7  ;;  %vm360_vm9 = vcmask (!%p87_p2), 124992   ;;  %vm486_vm11 = vcmask (!%p87_p2), 190592   ;;  %vm612_vm13 = vcmask (!%p87_p2), 256192  }
   0x9   : > { %s823_s18 = smov (!%p87_p2), 112   ;;  %s824_s19 = smov (!%p87_p2), 104   ;;  %vm361_vm10 = vmand (!%p87_p2), %vm360_vm9, %vm234_vm7 }
   0xa   : > { %s825_s23 = smov (!%p87_p2), 56   ;;  %s826_s24 = smov (!%p87_p2), 48   ;;  %vm487_vm12 = vmand (!%p87_p2), %vm486_vm11, %vm234_vm7 }
   0xb   : > { %s827_s25 = smov (!%p87_p2), 40   ;;  %s828_s26 = smov (!%p87_p2), 8   ;;  %vm613_vm14 = vmand (!%p87_p2), %vm612_vm13, %vm234_vm7 }
   0xc   : > { %s829_s27 = smov (!%p87_p2), 16   ;;  %s830_s28 = smov (!%p87_p2), 24  }
   0xd   : > { %s953_s7 = smov (!%p104_p3, %s670_s7), 1 }
   0xe   : > { %s675_s8 = sshll.u32 %s953_s7, 2 }
   0xf   : > { %s863_s11 = scalar_lea.vmem %s950_s0, %s675_s8  ;;  %s912_s22 = scalar_lea.vmem %s951_s1, %s675_s8 }
  0x10   : > { %v113_v1 = vld [vmem:[%s863_s11] sm:$0x7] }
  0x11   : > { %v677_v2 = vcombine.low %v113_v1, %v113_v1  ;;  %v872_v5 = vld [vmem:[%s863_s11] ss:$0 sps:$4 sm:$0x77]  }
  0x12   : > { %v877_v11 = vld [vmem:[%s863_s11] ss:$0 sps:$4 sm:$0x77]  }
  0x13   : > { %117 = vrot.lane.b32.xlu0 %v677_v2, %s816_s12  ;;  %179 = vrot.lane.b32.xlu1 %v677_v2, %s817_s13  ;;  %v887_v22 = vld [vmem:[%s863_s11] ss:$0 sps:$4 sm:$0x77]  }
  0x14   : > { %v236_v37 = vld [vmem:[%s912_s22] sm:$0x7] }
  0x17   : > { %245 = vrot.lane.b32.xlu1 %v872_v5, %s818_s14 }
  0x85   : > { %v118_v3 = vpop.permute.xlu0 %117  ;;  %v180_v12 = vpop.permute.xlu1 %179 }
  0x86   : > { %v124_v4 = vsel %vm119_vm1, %v118_v3, 0  ;;  %v190_v16 = vand.u32 %v880_v15, %v180_v12 }
  0x87   : > { %714 = vmatpush3.bf16.xpose.msra.mxu0 %v124_v4 }
  0x88   : > { %731 = vmatprep.subr.bf16.mxu0 %v814_v0  ;;  %720 = vmatpush3.bf16.msra.mxu1 %v190_v16 }
  0x89   : > { %725 = vmatprep.subr.bf16.mxu1 %v814_v0  ;;  %v246_v23 = vpop.permute.xlu1 %245 }
  0x8a   : > { %v251_v29 = vsel %vm119_vm1, %v246_v23, 0 }
  0x8e   : > { %716 = vmatmul.mubr.msk.bf16.vlgmr.msra.gmra.mrb[0].mxu0 %vm119_vm1, %v113_v1 }
  0x8f   : > { %733 = vmatprep.mubr.msk.bf16.mxu0 %vm815_vm0, %v814_v0 }
 0x161   : > { %v160_v6 = vpop.f32.mrb[0].mxu0 }
 0x162   : > { %v717_v7 = vpop.f32.mrb[1].mxu0  ;;  %v167_v8 = vsel %vm166_vm2, %v160_v6, -inf }
 0x163   : > { %168 = vmax.xlane.f32.xlu0 %v167_v8  ;;  %v163_v9 = vpop.f32.mrb[2].mxu0 }
 0x164   : > { %v718_v10 = vpop.f32.mrb[3].mxu0 }
 0x179   : > { %497 = vrot.lane.b32.xlu0 %v877_v11, %s819_s15 }
 0x1f0   : > { %v169_v17 = vpop.xlane.xlu0 %168 }
 0x1f1   : > { %v170_v18 = vsub.f32 %v160_v6, %v169_v17 }
 0x1f3   : > { %v171_v19 = vmul.f32 1.442695, %v170_v18 }
 0x1f4   : > { %v498_v32 = vpop.permute.xlu0 %497 }
 0x1f5   : > { %790 = vpow2.f32 %v171_v19  ;;  %v503_v34 = vsel %vm119_vm1, %v498_v32, 0 }
 0x1ff   : > { %v791_v20 = vpop.eup %790 }
 0x200   : > { %v173_v21 = vsel %vm166_vm2, %v791_v20, 0.0 }
 0x201   : > { %174 = vadd.xlane.f32.xlu1 %v173_v21 }
 0x212   : > { %243 = vrot.lane.b32.xlu1 %v872_v5, %s821_s16 }
 0x216   : > { %371 = vrot.lane.b32.xlu1 %v887_v22, %s822_s17 }
 0x21a   : > { %369 = vrot.lane.b32.xlu1 %v887_v22, %s823_s18 }
 0x21e   : > { %495 = vrot.lane.b32.xlu1 %v877_v11, %s824_s19 }
 0x28e   : > { %v175_v24 = vpop.xlane.xlu1 %174 }
 0x28f   : > { %792 = vrcp.f32 %v175_v24 }
 0x292   : > { %v244_v27 = vpop.permute.xlu1 %243 }
 0x296   : > { %v372_v30 = vpop.permute.xlu1 %371 }
 0x297   : > { %v377_v31 = vsel %vm119_vm1, %v372_v30, 0 }
 0x299   : > { %v793_v25 = vpop.eup %792 }
 0x29a   : > { %v177_v26 = vmul.f32 %v793_v25, %v791_v20  ;;  %v370_v33 = vpop.permute.xlu1 %369 }
 0x29c   : > { %v178_v28 = vpack.c.bf16 %v177_v26, %v177_v26 }
 0x29e   : > { %722 = vmatmul.mubr.msk.bf16.vlgmr.msra.gmra.mrb[0].mxu1 %vm181_vm5, %v178_v28  ;;  %v496_v35 = vpop.permute.xlu1 %495 }
 0x29f   : > { %726 = vmatpush3.bf16.xpose.msra.mxu1 %v251_v29  ;;  %727 = vmatprep.mubr.msk.bf16.mxu1 %vm815_vm0, %v814_v0 }
 0x2a0   : > { %737 = vmatprep.subr.bf16.mxu1 %v814_v0 }
 0x2a6   : > { %728 = vmatmul.mubr.msk.bf16.vlgmr.msra.gmra.mrb[4].mxu1 %vm119_vm1, %v244_v27 }
 0x2a7   : > { %738 = vmatpush3.bf16.xpose.msra.mxu1 %v377_v31  ;;  %739 = vmatprep.mubr.msk.bf16.mxu1 %vm815_vm0, %v814_v0 }
 0x2a8   : > { %749 = vmatprep.subr.bf16.mxu1 %v814_v0 }
 0x2ae   : > { %740 = vmatmul.mubr.msk.bf16.vlgmr.msra.gmra.mrb[8].mxu1 %vm119_vm1, %v370_v33 }
 0x2af   : > { %750 = vmatpush3.bf16.xpose.msra.mxu1 %v503_v34  ;;  %751 = vmatprep.mubr.msk.bf16.mxu1 %vm815_vm0, %v814_v0 }
 0x2b6   : > { %752 = vmatmul.mubr.msk.bf16.vlgmr.msra.gmra.mrb[12].mxu1 %vm119_vm1, %v496_v35 }
 0x371   : > { %v226_v36 = vpop.f32.mrb[0].mxu1 }
 0x372   : > { %v232_v38 = vpack.c.bf16 %v226_v36, %v226_v36  ;;  %v723_v39 = vpop.f32.mrb[1].mxu1 }
 0x373   : > { %v229_v40 = vpop.f32.mrb[2].mxu1 }
 0x374   : > { %v237_v41 = vsel %vm235_vm8, %v232_v38, %v236_v37  ;;  %v724_v42 = vpop.f32.mrb[3].mxu1 }
 0x375   : > { %238 = vst [vmem:[%s912_s22] sm:$0x7] %v237_v41 }
 0x379   : > { %v287_v43 = vpop.f32.mrb[4].mxu1 }
 0x37a   : > { %v729_v44 = vpop.f32.mrb[5].mxu1  ;;  %v293_v45 = vsel %vm166_vm2, %v287_v43, -inf }
 0x37b   : > { %294 = vmax.xlane.f32.xlu1 %v293_v45  ;;  %v290_v46 = vpop.f32.mrb[6].mxu1 }
 0x37c   : > { %v730_v47 = vpop.f32.mrb[7].mxu1  ;;  %v362_v42 = vld [vmem:[%s912_s22] sm:$0x7] }
 0x381   : > { %v413_v48 = vpop.f32.mrb[8].mxu1 }
 0x382   : > { %v419_v49 = vsel %vm166_vm2, %v413_v48, -inf  ;;  %v741_v50 = vpop.f32.mrb[9].mxu1 }
 0x383   : > { %420 = vmax.xlane.f32.xlu0 %v419_v49  ;;  %v416_v51 = vpop.f32.mrb[10].mxu1 }
 0x384   : > { %v742_v52 = vpop.f32.mrb[11].mxu1 }
 0x389   : > { %v539_v53 = vpop.f32.mrb[12].mxu1 }
 0x38a   : > { %v545_v54 = vsel %vm166_vm2, %v539_v53, -inf  ;;  %v753_v55 = vpop.f32.mrb[13].mxu1 }
 0x38b   : > { %546 = vmax.xlane.f32.xlu1 %v545_v54  ;;  %v542_v56 = vpop.f32.mrb[14].mxu1 }
 0x38c   : > { %v754_v57 = vpop.f32.mrb[15].mxu1 }
 0x408   : > { %v295_v58 = vpop.xlane.xlu1 %294 }
 0x409   : > { %v296_v59 = vsub.f32 %v287_v43, %v295_v58 }
 0x40b   : > { %v297_v60 = vmul.f32 1.442695, %v296_v59 }
 0x40d   : > { %794 = vpow2.f32 %v297_v60 }
 0x410   : > { %v421_v6 = vpop.xlane.xlu0 %420 }
 0x411   : > { %v422_v7 = vsub.f32 %v413_v48, %v421_v6 }
 0x413   : > { %v423_v8 = vmul.f32 1.442695, %v422_v7 }
 0x417   : > { %v795_v61 = vpop.eup %794 }
 0x418   : > { %v547_v62 = vpop.xlane.xlu1 %546  ;;  %v299_v63 = vsel %vm166_vm2, %v795_v61, 0.0 }
 0x419   : > { %v548_v1 = vsub.f32 %v539_v53, %v547_v62  ;;  %300 = vadd.xlane.f32.xlu1 %v299_v63 }
 0x41b   : > { %v549_v2 = vmul.f32 1.442695, %v548_v1 }
 0x41d   : > { %796 = vpow2.f32 %v549_v2 }
 0x41e   : > { %798 = vpow2.f32 %v423_v8 }
 0x427   : > { %v797_v3 = vpop.eup %796 }
 0x428   : > { %v551_v4 = vsel %vm166_vm2, %v797_v3, 0.0  ;;  %v799_v9 = vpop.eup %798 }
 0x429   : > { %552 = vadd.xlane.f32.xlu0 %v551_v4  ;;  %v425_v10 = vsel %vm166_vm2, %v799_v9, 0.0 }
 0x42a   : > { %305 = vrot.lane.b32.xlu1 %v872_v5, %s825_s23 }
 0x43f   : > { %431 = vrot.lane.b32.xlu0 %v887_v22, %s826_s24 }
 0x44e   : > { %426 = vadd.xlane.f32.xlu1 %v425_v10 }
 0x45f   : > { %557 = vrot.lane.b32.xlu1 %v877_v11, %s827_s25 }
 0x4a6   : > { %v301_v12 = vpop.xlane.xlu1 %300 }
 0x4a7   : > { %800 = vrcp.f32 %v301_v12 }
 0x4aa   : > { %v306_v13 = vpop.permute.xlu1 %305 }
 0x4ab   : > { %v311_v14 = vand.u32 %v306_v13, %v880_v15 }
 0x4ad   : > { %732 = vmatpush3.bf16.msra.mxu0 %v311_v14 }
 0x4ae   : > { %743 = vmatprep.subr.bf16.mxu0 %v814_v0 }
 0x4b1   : > { %v801_v5 = vpop.eup %800 }
 0x4b2   : > { %v303_v16 = vmul.f32 %v801_v5, %v795_v61 }
 0x4b4   : > { %v304_v17 = vpack.c.bf16 %v303_v16, %v303_v16 }
 0x4b6   : > { %734 = vmatmul.mubr.msk.bf16.vlgmr.msra.gmra.mrb[4].mxu0 %vm181_vm5, %v304_v17  ;;  %v553_v18 = vpop.xlane.xlu0 %552 }
 0x4b7   : > { %745 = vmatprep.mubr.msk.bf16.mxu0 %vm815_vm0, %v814_v0 }
 0x4ba   : > { %v432_v19 = vpop.permute.xlu0 %431 }
 0x4bb   : > { %v437_v11 = vand.u32 %v432_v19, %v880_v15 }
 0x4bd   : > { %744 = vmatpush3.bf16.msra.mxu0 %v437_v11 }
 0x4be   : > { %755 = vmatprep.subr.bf16.mxu0 %v814_v0 }
 0x4db   : > { %v427_v20 = vpop.xlane.xlu1 %426 }
 0x4dc   : > { %802 = vrcp.f32 %v427_v20 }
 0x4dd   : > { %804 = vrcp.f32 %v553_v18 }
 0x4df   : > { %v558_v21 = vpop.permute.xlu1 %557 }
 0x4e0   : > { %v563_v24 = vand.u32 %v558_v21, %v880_v15 }
 0x4e6   : > { %v803_v22 = vpop.eup %802 }
 0x4e7   : > { %v429_v23 = vmul.f32 %v803_v22, %v799_v9  ;;  %v805_v26 = vpop.eup %804 }
 0x4e8   : > { %v555_v27 = vmul.f32 %v805_v26, %v797_v3 }
 0x4e9   : > { %v430_v25 = vpack.c.bf16 %v429_v23, %v429_v23 }
 0x4ea   : > { %v556_v28 = vpack.c.bf16 %v555_v27, %v555_v27 }
 0x4eb   : > { %746 = vmatmul.mubr.msk.bf16.vlgmr.msra.gmra.mrb[8].mxu0 %vm181_vm5, %v430_v25 }
 0x4ec   : > { %756 = vmatpush3.bf16.msra.mxu0 %v563_v24  ;;  %757 = vmatprep.mubr.msk.bf16.mxu0 %vm815_vm0, %v814_v0 }
 0x4f3   : > { %758 = vmatmul.mubr.msk.bf16.vlgmr.msra.gmra.mrb[12].mxu0 %vm181_vm5, %v556_v28 }
 0x589   : > { %v347_v29 = vpop.f32.mrb[4].mxu0 }
 0x58a   : > { %v694_v30 = vpack.c.bf16 %v347_v29, %v347_v29  ;;  %v735_v31 = vpop.f32.mrb[5].mxu0 }
 0x58b   : > { %v350_v32 = vpop.f32.mrb[6].mxu0 }
 0x58c   : > { %357 = vrot.lane.b32.xlu1 %v694_v30, %s828_s26  ;;  %v736_v33 = vpop.f32.mrb[7].mxu0 }
 0x5be   : > { %v473_v15 = vpop.f32.mrb[8].mxu0 }
 0x5bf   : > { %v695_v34 = vpack.c.bf16 %v473_v15, %v473_v15  ;;  %v747_v35 = vpop.f32.mrb[9].mxu0 }
 0x5c0   : > { %v476_v36 = vpop.f32.mrb[10].mxu0 }
 0x5c1   : > { %483 = vrot.lane.b32.xlu0 %v695_v34, %s829_s27  ;;  %v748_v0 = vpop.f32.mrb[11].mxu0 }
 0x5c6   : > { %v599_v37 = vpop.f32.mrb[12].mxu0 }
 0x5c7   : > { %v696_v38 = vpack.c.bf16 %v599_v37, %v599_v37  ;;  %v759_v39 = vpop.f32.mrb[13].mxu0 }
 0x5c8   : > { %v602_v40 = vpop.f32.mrb[14].mxu0 }
 0x5c9   : > { %609 = vrot.lane.b32.xlu1 %v696_v38, %s830_s28  ;;  %v760_v41 = vpop.f32.mrb[15].mxu0 }
 0x5fe   : > { %v358_v43 = vpop.permute.xlu1 %357 }
 0x5ff   : > { %v363_v44 = vsel %vm361_vm10, %v358_v43, %v362_v42 }
 0x600   : > { %364 = vst [vmem:[%s912_s22] sm:$0x7] %v363_v44 }
 0x607   : > { %v488_v45 = vld [vmem:[%s912_s22] sm:$0x7] }
 0x633   : > { %v484_v46 = vpop.permute.xlu0 %483 }
 0x634   : > { %v489_v47 = vsel %vm487_vm12, %v484_v46, %v488_v45 }
 0x635   : > { %490 = vst [vmem:[%s912_s22] sm:$0x7] %v489_v47 }
 0x63b   : > { %v610_v48 = vpop.permute.xlu1 %609 }
 0x63c   : > { %v614_v49 = vld [vmem:[%s912_s22] sm:$0x7] }
 0x63d   : > { %v615_v50 = vsel %vm613_vm14, %v610_v48, %v614_v49 }
 0x63e   : > { %616 = vst [vmem:[%s912_s22] sm:$0x7] %v615_v50 }
 0x63f PF: > { %s11_s6 = sadd.s32 1, %s812_s6  }
 0x640   : > { %p8_p4 = scmp.ge.s32.totalorder %s11_s6, 4  }
 0x642   :  { %10 = sbr.rel (!%p8_p4) target bundleno = 1 (0x1), region = 54 }

// kernel: _lambda_.17
= control target key start
LH: loop header
LB: loop body
LE: loop exit
PB: predicated region body
PF: predicated region fallthrough
CT: control target
= control target key end

     0   :  { %v140_v0 = vmov 0.0   ;;  %vm141_vm0 = vmmov 0   ;;  %vm48_vm1 = vcmask 261120   ;;  %vm107_vm2 = vcmask 257024   ;;  %s191_s1 = inlined_call_operand.vmem [shape: bf16[32,32], index: 1, kind: input, shape index: {}]   ;;  %s192_s0 = inlined_call_operand.vmem [shape: bf16[10,32], index: 0, kind: input, shape index: {}]   ;;  %s193_s3 = inlined_call_operand.vmem [shape: bf16[10,32], index: 3, kind: input, shape index: {}]   ;;  %s194_s2 = inlined_call_operand.vmem [shape: f32[1,32], index: 2, kind: input, shape index: {}]   ;;  %s195_s4 = inlined_call_operand.vmem [shape: bf16[10,32], index: 4, kind: output, shape index: {}]  }
   0x1   :  { %127 = vmatprep.subr.bf16.mxu0 %v140_v0  ;;  %v137_v1 = vld [vmem:[%s191_s1] sm:$0xff]   ;;  %131 = vmatprep.mubr.msk.bf16.mxu0 %vm141_vm0, %v140_v0  ;;  %v138_v2 = vld [vmem:[%s191_s1 + $0x8] sm:$0xff]   ;;  %vm109_vm3 = vcmask 253952  }
   0x2   :  { %128 = vmatpush3.bf16.msra.mxu0 %v137_v1  ;;  %v139_v3 = vld [vmem:[%s192_s0] sm:$0x1f]  }
   0x3   :  { %129 = vmatprep.subr.bf16.mxu0 %v140_v0  ;;  %v93_v4 = vld [vmem:[%s193_s3] sm:$0xf]  ;;  %v94_v6 = vld [vmem:[%s193_s3 + $0x4] sm:$0x1] }
   0x4   :  { %v115_v5 = vld [vmem:[%s194_s2] ss:$0 sm:$0xff]  ;;  %v95_v7 = vunpack.c.l.bf16 %v93_v4  ;;  %v96_v11 = vunpack.c.l.bf16 %v94_v6 }
   0x6   :  { %130 = vmatpush3.bf16.msra.mxu0 %v138_v2 }
   0x9   :  { %132 = vmatmul.mubr.msk.bf16.vlgmr.msra.gmra.mrb[0].mxu0 %vm48_vm1, %v139_v3 }
  0xdc   :  { %v86_v8 = vpop.f32.mrb[0].mxu0 }
  0xdd   :  { %v87_v9 = vadd.f32 %v115_v5, %v86_v8  ;;  %v133_v10 = vpop.f32.mrb[1].mxu0 }
  0xde   :  { %v89_v12 = vpop.f32.mrb[2].mxu0 }
  0xdf   :  { %v97_v13 = vadd.f32 %v95_v7, %v87_v9  ;;  %v90_v14 = vadd.f32 %v115_v5, %v89_v12  ;;  %v134_v15 = vpop.f32.mrb[3].mxu0 }
  0xe1   :  { %v122_v16 = vpack.c.bf16 %v97_v13, %v97_v13  ;;  %v98_v17 = vadd.f32 %v96_v11, %v90_v14 }
  0xe3   :  { %108 = vst.msk [vmem:[%s195_s4] sm:$0xf] %vm107_vm2, %v122_v16  ;;  %v123_v18 = vpack.c.bf16 %v98_v17, %v98_v17 }
  0xe5   :  { %110 = vst.msk [vmem:[%s195_s4 + $0x4] sm:$0x1] %vm109_vm3, %v123_v18 }

// kernel: _lambda_.19
= control target key start
LH: loop header
LB: loop body
LE: loop exit
PB: predicated region body
PF: predicated region fallthrough
CT: control target
= control target key end

     0   :  { %v214_v0 = vmov 0.0   ;;  %vm215_vm0 = vmmov 0   ;;  %vm152_vm1 = vcmask 257024   ;;  %vm154_vm2 = vcmask 253952   ;;  %s283_s1 = inlined_call_operand.vmem [shape: bf16[128,32], index: 1, kind: input, shape index: {}]   ;;  %s284_s0 = inlined_call_operand.vmem [shape: bf16[10,128], index: 0, kind: input, shape index: {}]   ;;  %s285_s3 = inlined_call_operand.vmem [shape: bf16[10,32], index: 3, kind: input, shape index: {}]   ;;  %s286_s2 = inlined_call_operand.vmem [shape: f32[1,32], index: 2, kind: input, shape index: {}]   ;;  %s287_s4 = inlined_call_operand.vmem [shape: bf16[10,32], index: 4, kind: output, shape index: {}]  }
   0x1   :  { %183 = vmatprep.subr.bf16.mxu0 %v214_v0  ;;  %v205_v1 = vld [vmem:[%s283_s1] sm:$0xff]   ;;  %199 = vmatprep.mubr.msk.bf16.mxu0 %vm215_vm0, %v214_v0  ;;  %v206_v2 = vld [vmem:[%s283_s1 + $0x8] sm:$0xff]   ;;  %v207_v3 = vld [vmem:[%s283_s1 + $0x10] sm:$0xff]  }
   0x2   :  { %184 = vmatpush3.bf16.msra.mxu0 %v205_v1  ;;  %v208_v4 = vld [vmem:[%s283_s1 + $0x18] sm:$0xff]   ;;  %v209_v5 = vld [vmem:[%s283_s1 + $0x20] sm:$0xff]   ;;  %v210_v6 = vld [vmem:[%s283_s1 + $0x28] sm:$0xff]  }
   0x3   :  { %185 = vmatprep.subr.bf16.mxu0 %v214_v0  ;;  %v211_v7 = vld [vmem:[%s283_s1 + $0x30] sm:$0xff]   ;;  %v212_v8 = vld [vmem:[%s283_s1 + $0x38] sm:$0xff]   ;;  %v213_v9 = vld [vmem:[%s284_s0] sm:$0x1f]  }
   0x4   :  { %v138_v10 = vld [vmem:[%s285_s3] sm:$0xf]  ;;  %v139_v12 = vld [vmem:[%s285_s3 + $0x4] sm:$0x1] }
   0x5   :  { %v160_v11 = vld [vmem:[%s286_s2] ss:$0 sm:$0xff]  ;;  %v140_v13 = vunpack.c.l.bf16 %v138_v10  ;;  %v141_v17 = vunpack.c.l.bf16 %v139_v12 }
   0x6   :  { %186 = vmatpush3.bf16.msra.mxu0 %v206_v2 }
   0x7   :  { %187 = vmatprep.subr.bf16.mxu0 %v214_v0 }
   0xa   :  { %188 = vmatpush3.bf16.msra.mxu0 %v207_v3 }
   0xb   :  { %189 = vmatprep.subr.bf16.mxu0 %v214_v0 }
   0xe   :  { %190 = vmatpush3.bf16.msra.mxu0 %v208_v4 }
   0xf   :  { %191 = vmatprep.subr.bf16.mxu0 %v214_v0 }
  0x12   :  { %192 = vmatpush3.bf16.msra.mxu0 %v209_v5 }
  0x13   :  { %193 = vmatprep.subr.bf16.mxu0 %v214_v0 }
  0x16   :  { %194 = vmatpush3.bf16.msra.mxu0 %v210_v6 }
  0x17   :  { %195 = vmatprep.subr.bf16.mxu0 %v214_v0 }
  0x1a   :  { %196 = vmatpush3.bf16.msra.mxu0 %v211_v7 }
  0x1b   :  { %197 = vmatprep.subr.bf16.mxu0 %v214_v0 }
  0x1e   :  { %198 = vmatpush3.bf16.msra.mxu0 %v212_v8 }
  0x21   :  { %200 = vmatmul.mubr.bf16.vlgmr.msra.gmra.mrb[0].mxu0 %v213_v9 }
  0xf4   :  { %v131_v14 = vpop.f32.mrb[0].mxu0 }
  0xf5   :  { %v132_v15 = vadd.f32 %v160_v11, %v131_v14  ;;  %v201_v16 = vpop.f32.mrb[1].mxu0 }
  0xf6   :  { %v134_v18 = vpop.f32.mrb[2].mxu0 }
  0xf7   :  { %v142_v19 = vadd.f32 %v140_v13, %v132_v15  ;;  %v135_v20 = vadd.f32 %v160_v11, %v134_v18  ;;  %v202_v21 = vpop.f32.mrb[3].mxu0 }
  0xf9   :  { %v172_v22 = vpack.c.bf16 %v142_v19, %v142_v19  ;;  %v143_v23 = vadd.f32 %v141_v17, %v135_v20 }
  0xfb   :  { %153 = vst.msk [vmem:[%s287_s4] sm:$0xf] %vm152_vm1, %v172_v22  ;;  %v173_v24 = vpack.c.bf16 %v143_v23, %v143_v23 }
  0xfd   :  { %155 = vst.msk [vmem:[%s287_s4 + $0x4] sm:$0x1] %vm154_vm2, %v173_v24 }

// kernel: _lambda_.18
= control target key start
LH: loop header
LB: loop body
LE: loop exit
PB: predicated region body
PF: predicated region fallthrough
CT: control target
= control target key end

     0   :  { %vm29_vm0 = vcmask 261120   ;;  %vm33_vm1 = vcmask 254976   ;;  %v238_v17 = vmov 0.0   ;;  %vm239_vm2 = vmmov 0   ;;  %s300_s0 = inlined_call_operand.vmem [shape: bf16[10,32], index: 0, kind: input, shape index: {}]   ;;  %s301_s1 = inlined_call_operand.vmem [shape: bf16[32,128], index: 1, kind: input, shape index: {}]   ;;  %s302_s3 = inlined_call_operand.vmem [shape: f32[1,32], index: 3, kind: input, shape index: {}]   ;;  %s303_s4 = inlined_call_operand.vmem [shape: f32[1,32], index: 4, kind: input, shape index: {}]   ;;  %s304_s2 = inlined_call_operand.vmem [shape: f32[1,128], index: 2, kind: input, shape index: {}]   ;;  %s305_s5 = inlined_call_operand.vmem [shape: bf16[10,128], index: 5, kind: output, shape index: {}]  }
   0x1   :  { %v25_v0 = vld [vmem:[%s300_s0] sm:$0xf]  ;;  %v26_v1 = vld [vmem:[%s300_s0 + $0x4] sm:$0x1]  ;;  %213 = vmatprep.subr.bf16.mxu0 %v238_v17  ;;  %v224_v18 = vld [vmem:[%s301_s1 + $0x8] sm:$0xff]   ;;  %217 = vmatprep.mubr.msk.bf16.mxu0 %vm239_vm2, %v238_v17  ;;  %vm84_vm3 = vcmask 257024  }
   0x2   :  { %v27_v2 = vunpack.c.l.bf16 %v25_v0  ;;  %v28_v3 = vunpack.c.l.bf16 %v26_v1  ;;  %v223_v16 = vld [vmem:[%s301_s1] sm:$0xff]   ;;  %vm86_vm4 = vcmask 253952  }
   0x3   :  { %214 = vmatpush3.bf16.msra.mxu0 %v223_v16  ;;  %v193_v26 = vld [vmem:[%s302_s3] ss:$0 sm:$0xff] }
   0x4   :  { %v30_v4 = vsel %vm29_vm0, %v27_v2, 0.0  ;;  %v34_v5 = vsel %vm33_vm1, %v28_v3, 0.0  ;;  %215 = vmatprep.subr.bf16.mxu0 %v238_v17  ;;  %v194_v28 = vld [vmem:[%s303_s4] ss:$0 sm:$0xff] }
   0x5   :  { %31 = vadd.xlane.f32.xlu0 %v30_v4  ;;  %v197_v38 = vld [vmem:[%s304_s2] ss:$0 sm:$0xff] }
   0x7   :  { %216 = vmatpush3.bf16.msra.mxu0 %v224_v18 }
   0x9   :  { %35 = vadd.xlane.f32.xlu0 %v34_v5 }
  0x92   :  { %v32_v6 = vpop.xlane.xlu0 %31 }
  0x93   :  { %v38_v7 = vmul.f32 0.03125, %v32_v6 }
  0x95   :  { %v40_v8 = vsub.f32 %v27_v2, %v38_v7 }
  0x96   :  { %v36_v9 = vpop.xlane.xlu0 %35 }
  0x97   :  { %v39_v10 = vmul.f32 0.03125, %v36_v9  ;;  %v42_v11 = vmul.f32 %v40_v8, %v40_v8 }
  0x99   :  { %v41_v12 = vsub.f32 %v28_v3, %v39_v10  ;;  %v44_v13 = vsel %vm29_vm0, %v42_v11, 0.0 }
  0x9a   :  { %45 = vadd.xlane.f32.xlu1 %v44_v13 }
  0x9b   :  { %v43_v14 = vmul.f32 %v41_v12, %v41_v12 }
  0x9d   :  { %v47_v15 = vsel %vm33_vm1, %v43_v14, 0.0 }
  0x9e   :  { %48 = vadd.xlane.f32.xlu1 %v47_v15 }
 0x127   :  { %v46_v19 = vpop.xlane.xlu1 %45 }
 0x128   :  { %v50_v20 = vmul.f32 0.03125, %v46_v19 }
 0x12a   :  { %v52_v21 = vadd.f32 1e-05, %v50_v20 }
 0x12b   :  { %v49_v22 = vpop.xlane.xlu1 %48 }
 0x12c   :  { %226 = vrsqrt.f32 %v52_v21  ;;  %v51_v23 = vmul.f32 0.03125, %v49_v22 }
 0x12e   :  { %v53_v24 = vadd.f32 1e-05, %v51_v23 }
 0x130   :  { %228 = vrsqrt.f32 %v53_v24 }
 0x136   :  { %v227_v25 = vpop.eup %226 }
 0x137   :  { %v56_v27 = vmul.f32 %v227_v25, %v40_v8 }
 0x139   :  { %v65_v29 = vmul.f32 %v193_v26, %v56_v27 }
 0x13a   :  { %v229_v30 = vpop.eup %228 }
 0x13b   :  { %v74_v31 = vadd.f32 %v194_v28, %v65_v29  ;;  %v57_v32 = vmul.f32 %v229_v30, %v41_v12 }
 0x13d   :  { %v206_v33 = vpack.c.bf16 %v74_v31, %v74_v31  ;;  %v66_v34 = vmul.f32 %v193_v26, %v57_v32 }
 0x13f   :  { %85 = vst.msk [vmem:[#allocation2] sm:$0xf] %vm84_vm3, %v206_v33  ;;  %v75_v35 = vadd.f32 %v194_v28, %v66_v34 }
 0x141   :  { %v207_v36 = vpack.c.bf16 %v75_v35, %v75_v35 }
 0x143   :  { %87 = vst.msk [vmem:[#allocation2 + $0x4] sm:$0x1] %vm86_vm4, %v207_v36 }
 0x14a   :  { %v225_v37 = vld [vmem:[#allocation2] sm:$0x1f]  }
 0x14b   :  { %218 = vmatmul.mubr.msk.bf16.vlgmr.msra.gmra.mrb[0].mxu0 %vm29_vm0, %v225_v37 }
 0x21e   :  { %v156_v39 = vpop.f32.mrb[0].mxu0 }
 0x21f   :  { %v157_v40 = vadd.f32 %v197_v38, %v156_v39  ;;  %v219_v41 = vpop.f32.mrb[1].mxu0 }
 0x220   :  { %v159_v42 = vpop.f32.mrb[2].mxu0 }
 0x221   :  { %v202_v43 = vmul.f32 -1.702, %v157_v40  ;;  %v160_v44 = vadd.f32 %v197_v38, %v159_v42  ;;  %v220_v45 = vpop.f32.mrb[3].mxu0 }
 0x223   :  { %v167_v46 = vmul.f32 1.442695, %v202_v43  ;;  %v203_v47 = vmul.f32 -1.702, %v160_v44 }
 0x225   :  { %230 = vpow2.f32 %v167_v46  ;;  %v169_v48 = vmul.f32 1.442695, %v203_v47 }
 0x227   :  { %232 = vpow2.f32 %v169_v48 }
 0x22f   :  { %v231_v49 = vpop.eup %230 }
 0x230   :  { %v171_v50 = vadd.f32 1.0, %v231_v49 }
 0x231   :  { %v233_v51 = vpop.eup %232 }
 0x232   :  { %234 = vrcp.f32 %v171_v50  ;;  %v172_v52 = vadd.f32 1.0, %v233_v51 }
 0x234   :  { %236 = vrcp.f32 %v172_v52 }
 0x23c   :  { %v235_v53 = vpop.eup %234 }
 0x23d   :  { %v177_v54 = vmul.f32 %v235_v53, %v157_v40 }
 0x23e   :  { %v237_v55 = vpop.eup %236 }
 0x23f   :  { %v208_v56 = vpack.c.bf16 %v177_v54, %v177_v54  ;;  %v178_v57 = vmul.f32 %v237_v55, %v160_v44 }
 0x241   :  { %187 = vst [vmem:[%s305_s5] sm:$0xf] %v208_v56  ;;  %v209_v58 = vpack.c.bf16 %v178_v57, %v178_v57 }
 0x243   :  { %188 = vst [vmem:[%s305_s5 + $0x4] sm:$0x1] %v209_v58 }

// kernel: _lambda_.25
= control target key start
LH: loop header
LB: loop body
LE: loop exit
PB: predicated region body
PF: predicated region fallthrough
CT: control target
= control target key end

     0   :  { %13 = vsyncpa [#allocation3], 0  ;;  %vm28_vm0 = vcmask 254976   ;;  %s459_s0 = inlined_call_operand.vmem [shape: bf16[2,32], index: 0, kind: input, shape index: {}]   ;;  %s460_s1 = inlined_call_operand.vmem [shape: f32[1,32], index: 1, kind: input, shape index: {}]   ;;  %s461_s2 = inlined_call_operand.vmem [shape: f32[1,32], index: 2, kind: input, shape index: {}]   ;;  %s462_s3 = inlined_call_operand.vmem [shape: bf16[32,24], index: 3, kind: input, shape index: {}]   ;;  %s463_s4 = inlined_call_operand.vmem [shape: bf16[32,24], index: 4, kind: input, shape index: {}]   ;;  %s464_s5 = inlined_call_operand.hbm [shape: f32[2,32], index: 5, kind: output, shape index: {0}]   ;;  %s465_s6 = inlined_call_operand.hbm [shape: f32[2,24], index: 6, kind: output, shape index: {1}]   ;;  %s466_s7 = inlined_call_operand.hbm [shape: f32[2,24], index: 7, kind: output, shape index: {2}]  }
   0x1   :  { %v26_v0 = vld [vmem:[%s459_s0] sm:$0x1] }
   0x2   :  { %v27_v1 = vunpack.c.l.bf16 %v26_v0 }
   0x4   :  { %v29_v2 = vsel %vm28_vm0, %v27_v1, 0.0 }
   0x5   :  { %14 = vsyncpa [#allocation5], 0  ;;  %30 = vadd.xlane.f32.xlu0 %v29_v2  ;;  %v270_v8 = vld [vmem:[%s462_s3] sm:$0xff]   ;;  %v350_v10 = vmov 0.0   ;;  %v272_v11 = vld [vmem:[%s462_s3 + $0x8] sm:$0xff]   ;;  %vm351_vm1 = vmmov 0  }
   0x6   :  { %v271_v9 = vld [vmem:[%s463_s4] sm:$0xff]   ;;  %249 = vmatprep.subr.bf16.mxu0 %v350_v10  ;;  %257 = vmatprep.subr.bf16.mxu1 %v350_v10  ;;  %v273_v12 = vld [vmem:[%s463_s4 + $0x8] sm:$0xff]   ;;  %vm77_vm2 = vcmask 261120   ;;  %vm122_vm3 = vcmask 189440  }
   0x7   :  { %250 = vmatpush3.bf16.msra.mxu0 %v270_v8  ;;  %258 = vmatpush3.bf16.msra.mxu1 %v271_v9  ;;  %v235_v17 = vld [vmem:[%s460_s1] ss:$0 sm:$0xff]  ;;  %s352_s1 = smov [#allocation2]  }
   0x8   :  { %251 = vmatprep.subr.bf16.mxu0 %v350_v10  ;;  %259 = vmatprep.subr.bf16.mxu1 %v350_v10  ;;  %v236_v19 = vld [vmem:[%s461_s2] ss:$0 sm:$0xff]  ;;  %s200_s2 = sshll.u32 %s352_s1, 4  ;;  %s201_s2 = int_to_ptr.vmem [resolvable:$true] %s200_s2 }
   0x9   :  { %253 = vmatprep.mubr.msk.bf16.mxu0 %vm351_vm1, %v350_v10  ;;  %261 = vmatprep.mubr.msk.bf16.mxu1 %vm351_vm1, %v350_v10  ;;  %s280_s4 = scalar_lea.vmem %s201_s2, 32  ;;  %p285_p1 = scmp.lt.s32.totalorder %s201_s2, %s201_s2 }
   0xa   :  { %p281_p0 = scmp.ne.s32.totalorder %s201_s2, %s280_s4  ;;  %p286_p2 = scmp.lt.s32.totalorder %s280_s4, %s280_s4 }
   0xb   :  { %252 = vmatpush3.bf16.msra.mxu0 %v272_v11  ;;  %260 = vmatpush3.bf16.msra.mxu1 %v273_v12 }
   0xc   :  { %p287_p3 = por %p286_p2, %p285_p1 }
   0xe   :  { %p288_p4 = pnand %p287_p3, %p281_p0 }
  0x92   :  { %v31_v3 = vpop.xlane.xlu0 %30 }
  0x93   :  { %v33_v4 = vmul.f32 0.03125, %v31_v3 }
  0x95   :  { %v34_v5 = vsub.f32 %v27_v1, %v33_v4 }
  0x97   :  { %v35_v6 = vmul.f32 %v34_v5, %v34_v5 }
  0x99   :  { %v36_v7 = vsel %vm28_vm0, %v35_v6, 0.0 }
  0x9a   :  { %37 = vadd.xlane.f32.xlu0 %v36_v7 }
 0x127   :  { %v38_v13 = vpop.xlane.xlu0 %37 }
 0x128   :  { %v39_v14 = vmul.f32 0.03125, %v38_v13 }
 0x12a   :  { %v40_v15 = vadd.f32 1e-05, %v39_v14 }
 0x12c   :  { %274 = vrsqrt.f32 %v40_v15 }
 0x136   :  { %v275_v16 = vpop.eup %274 }
 0x137   :  { %v42_v18 = vmul.f32 %v275_v16, %v34_v5 }
 0x139   :  { %v50_v20 = vmul.f32 %v235_v17, %v42_v18 }
 0x13b   :  { %v58_v21 = vadd.f32 %v236_v19, %v50_v20 }
 0x13d   :  { %v60_v22 = vpack.c.bf16 %v58_v21, %v58_v21  ;;  %59 = vst.msk [vmem:[#allocation2] sm:$0x3] %vm28_vm0, %v58_v21 }
 0x13f   :  { %254 = vmatmul.mubr.msk.bf16.vlgmr.msra.gmra.mrb[0].mxu0 %vm77_vm2, %v60_v22  ;;  %262 = vmatmul.mubr.msk.bf16.vlgmr.msra.gmra.mrb[0].mxu1 %vm77_vm2, %v60_v22 }
 0x212   :  { %v115_v23 = vpop.f32.mrb[0].mxu0  ;;  %v180_v24 = vpop.f32.mrb[0].mxu1 }
 0x213   :  { %v255_v25 = vpop.f32.mrb[1].mxu0  ;;  %v263_v26 = vpop.f32.mrb[1].mxu1  ;;  %v121_v27 = vmul.f32 %v115_v23, %v115_v23  ;;  %v186_v30 = vmul.f32 %v180_v24, %v180_v24 }
 0x214   :  { %v118_v28 = vpop.f32.mrb[2].mxu0  ;;  %v183_v29 = vpop.f32.mrb[2].mxu1 }
 0x215   :  { %v256_v31 = vpop.f32.mrb[3].mxu0  ;;  %v264_v32 = vpop.f32.mrb[3].mxu1  ;;  %v123_v33 = vsel %vm122_vm3, %v121_v27, 0.0  ;;  %v187_v34 = vsel %vm122_vm3, %v186_v30, 0.0 }
 0x216   :  { %124 = vadd.xlane.f32.xlu1 %v123_v33 }
 0x21a   :  { %188 = vadd.xlane.f32.xlu1 %v187_v34 }
 0x21b   :  { %291 = shalt.err (!%p288_p4)
}
 0x21c   :  { %s292_s15 = scalar_lea.hbm %s464_s5, 32 }
 0x21d   :  { %p293_p5 = scmp.ne.s32.totalorder %s464_s5, %s292_s15  ;;  %p296_p6 = scmp.lt.u32.totalorder %s292_s15, %s464_s5 }
 0x21f   :  { %p298_p7 = pnand %p296_p6, %p293_p5 }
 0x221   :  { %301 = shalt.err (!%p298_p7)
}
 0x222   :  { %203 = dma.vmem_to_hbm [thread:$0]  %s201_s2, 32, %s464_s5, [#allocation3]  }
 0x223   :  { %s353_s22 = smov [#allocation4]   ;;  %s354_s24 = smov [#allocation6]  }
 0x224   :  { %s210_s23 = sshll.u32 %s353_s22, 4  ;;  %s220_s25 = sshll.u32 %s354_s24, 4  ;;  %s211_s23 = int_to_ptr.vmem [resolvable:$true] %s210_s23  ;;  %s221_s25 = int_to_ptr.vmem [resolvable:$true] %s220_s25 }
 0x225   :  { %s302_s26 = scalar_lea.vmem %s211_s23, 32  ;;  %p307_p9 = scmp.lt.s32.totalorder %s211_s23, %s211_s23 }
 0x226   :  { %p303_p8 = scmp.ne.s32.totalorder %s211_s23, %s302_s26  ;;  %p308_p10 = scmp.lt.s32.totalorder %s302_s26, %s302_s26 }
 0x228   :  { %p309_p11 = por %p308_p10, %p307_p9 }
 0x22a   :  { %p310_p12 = pnand %p309_p11, %p303_p8 }
 0x2a3   :  { %v125_v35 = vpop.xlane.xlu1 %124 }
 0x2a4   :  { %v126_v36 = vmax.f32 %v125_v35, 1e-24 }
 0x2a6   :  { %276 = vrsqrt.f32 %v126_v36 }
 0x2a7   :  { %v189_v37 = vpop.xlane.xlu1 %188 }
 0x2a8   :  { %v190_v38 = vmax.f32 %v189_v37, 1e-24 }
 0x2aa   :  { %278 = vrsqrt.f32 %v190_v38 }
 0x2b0   :  { %v277_v39 = vpop.eup %276 }
 0x2b1   :  { %v128_v40 = vmul.f32 %v277_v39, %v115_v23 }
 0x2b3   :  { %129 = vst.msk [vmem:[#allocation4] sm:$0x3] %vm122_vm3, %v128_v40 }
 0x2b4   :  { %v279_v41 = vpop.eup %278 }
 0x2b5   :  { %313 = shalt.err (!%p310_p12)
}
 0x2b6   :  { %s314_s28 = scalar_lea.hbm %s465_s6, 32 }
 0x2b7   :  { %p315_p13 = scmp.ne.s32.totalorder %s465_s6, %s314_s28  ;;  %p318_p0 = scmp.lt.u32.totalorder %s314_s28, %s465_s6 }
 0x2b9   :  { %p320_p1 = pnand %p318_p0, %p315_p13 }
 0x2bb   :  { %323 = shalt.err (!%p320_p1)
}
 0x2bc   :  { %213 = dma.vmem_to_hbm [thread:$0]  %s211_s23, 32, %s465_s6, [#allocation5]   ;;  %v192_v42 = vmul.f32 %v279_v41, %v180_v24 }
 0x2bd   :  { %s324_s11 = scalar_lea.vmem %s221_s25, 32  ;;  %p329_p3 = scmp.lt.s32.totalorder %s221_s25, %s221_s25 }
 0x2be   :  { %193 = vst.msk [vmem:[#allocation6] sm:$0x3] %vm122_vm3, %v192_v42  ;;  %p325_p2 = scmp.ne.s32.totalorder %s221_s25, %s324_s11  ;;  %p330_p4 = scmp.lt.s32.totalorder %s324_s11, %s324_s11 }
 0x2c0   :  { %p331_p5 = por %p330_p4, %p329_p3 }
 0x2c2   :  { %p332_p6 = pnand %p331_p5, %p325_p2 }
 0x2c4   :  { %335 = shalt.err (!%p332_p6)
}
 0x2c5   :  { %s336_s1 = scalar_lea.hbm %s466_s7, 32 }
 0x2c6   :  { %p337_p7 = scmp.ne.s32.totalorder %s466_s7, %s336_s1  ;;  %p340_p8 = scmp.lt.u32.totalorder %s336_s1, %s466_s7 }
 0x2c8   :  { %p342_p9 = pnand %p340_p8, %p337_p7 }
 0x2ca   :  { %345 = shalt.err (!%p342_p9)
}
 0x2cb   :  { %223 = dma.vmem_to_hbm [thread:$0]  %s221_s25, 32, %s466_s7, [#allocation5]  }
 0x2cc   :  { %346 = dma.done.wait [#allocation3], 32  }
 0x2cd   :  { %347 = vsyncadd [#allocation3], 4294967264 }
 0x2ce   :  { %348 = dma.done.wait [#allocation5], 64  }
 0x2cf   :  { %349 = vsyncadd [#allocation5], 4294967232 }
 0x2d0   :  { %233 = vsyncpa [#allocation3], 1 }
 0x2d1   :  { %234 = vsyncpa [#allocation5], 1 }

</bundles_post_ra>
